<compile_context>
chip_gen: v7x
topology: tpu7x:2x2x1
jax: 0.10.0
libtpu: 0.0.40
codegen_flags: <defaults>
</compile_context>

<pallas_src>
import jax
import jax.numpy as jnp
from jax.experimental import pallas as pl
from jax.experimental.pallas import tpu as pltpu

# Module constants (from the PyTorch source).
N_EMBD = 256
HIDDEN = 4 * N_EMBD          # 1024
HC = 256                     # hidden-dim chunk processed per inner step
N_CHUNKS = HIDDEN // HC      # 4


def _ffn_kernel(x_ref, w1_ref, b1_ref, w2_ref, b2_ref, o_ref):
    """One grid step == TM flattened rows. Fused: l1 -> ReLU -> l2."""
    x = x_ref[...]                                      # (TM, C) bf16
    tm = x.shape[0]
    acc = jnp.zeros((tm, N_EMBD), jnp.float32)
    # 4 static iterations; static slices of the weight refs are free views.
    for c in range(N_CHUNKS):
        lo = c * HC
        # (TM, C) @ (C, HC) -> (TM, HC), bf16 operands, f32 accumulate (MXU).
        h = jnp.dot(x, w1_ref[:, lo:lo + HC],
                    preferred_element_type=jnp.float32)
        # Bias + ReLU in f32 on the VPU.
        h = jnp.maximum(h + b1_ref[:, lo:lo + HC], 0.0)
        # (TM, HC) @ (HC, C) -> (TM, C), accumulate across hidden chunks.
        acc = acc + jnp.dot(h.astype(jnp.bfloat16), w2_ref[lo:lo + HC, :],
                            preferred_element_type=jnp.float32)
    o_ref[...] = (acc + b2_ref[...]).astype(o_ref.dtype)


def _pick_tm(m):
    """Row tile: multiple of 8, <= 512, and >= 2 grid steps when possible."""
    if m < 16:
        return 8
    half = max(8, (m // 2 // 8) * 8)     # guarantees cdiv(m, tm) >= 2
    return min(512, half)


def feed_forward(x, params):
    """x: (B, T, C) float32.  params: (in, out)-layout weights / biases."""
    B, T, C = x.shape
    assert C == N_EMBD

    # Ship weights as bf16, biases in f32 (no-op casts if already converted).
    w1 = params["w1"].astype(jnp.bfloat16)   # (C, 4C)
    w2 = params["w2"].astype(jnp.bfloat16)   # (4C, C)
    b1 = params["b1"].astype(jnp.float32)    # (1, 4C)
    b2 = params["b2"].astype(jnp.float32)    # (1, C)

    # Flatten all token positions into one row axis; no padding — Pallas masks
    # writes of the partial last block and rows are fully independent.
    M = B * T
    x2 = x.reshape(M, C).astype(jnp.bfloat16)
    tm = _pick_tm(M)
    grid = pl.cdiv(M, tm)

    # Constant index_map: weights stay resident in VMEM across grid steps.
    # (pipeline_mode=pl.Buffered(1) would halve their VMEM footprint; at
    #  ~1 MiB bf16 it is a no-op, so left at the default.)
    full = lambda arr: pl.BlockSpec(arr.shape, lambda i: (0, 0))

    cost = pl.CostEstimate(
        flops=4 * M * C * HIDDEN,            # two matmuls, 2 flops per MAC
        transcendentals=0,
        bytes_accessed=(x2.size * 2 + w1.size * 2 + w2.size * 2
                        + b1.size * 4 + b2.size * 4 + M * C * 4),
    )

    y2 = pl.pallas_call(
        _ffn_kernel,
        out_shape=jax.ShapeDtypeStruct((M, C), jnp.float32),
        grid_spec=pltpu.PrefetchScalarGridSpec(
            num_scalar_prefetch=0,
            grid=(grid,),
            in_specs=[
                pl.BlockSpec((tm, C), lambda i: (i, 0)),   # x rows
                full(w1), full(b1),                        # l1
                full(w2), full(b2),                        # l2
            ],
            out_specs=pl.BlockSpec((tm, C), lambda i: (i, 0)),
        ),
        compiler_params=pltpu.CompilerParams(
            dimension_semantics=("parallel",)),
        cost_estimate=cost,
    )(x2, w1, b1, w2, b2)

    return y2.reshape(B, T, C)


def _reference(x, p):
    """Pure-JAX f32 reference mirroring the PyTorch forward."""
    h = jnp.maximum(x @ p["w1"] + p["b1"][0], 0.0)
    return h @ p["w2"] + p["b2"][0]


if __name__ == "__main__":
    key = jax.random.PRNGKey(0)
    # Small shapes consistent with the module: 4 batches of 64 tokens, C=256.
    # Flattened rows M = 256 -> TM = 128 -> 2 grid steps (both v7x TCs busy).
    B, T = 4, 64

    keys = jax.random.split(key, 5)
    scale = 0.02
    params = {
        "w1": scale * jax.random.normal(keys[0], (N_EMBD, HIDDEN), jnp.float32),
        "b1": scale * jax.random.normal(keys[1], (1, HIDDEN), jnp.float32),
        "b2": scale * jax.random.normal(keys[3], (1, N_EMBD), jnp.float32),
        "w2": scale * jax.random.normal(keys[2], (HIDDEN, N_EMBD), jnp.float32),
    }
    x = jax.random.normal(keys[4], (B, T, N_EMBD), jnp.float32)

    y = feed_forward(x, params)
    y = jax.block_until_ready(y)

    y_ref = _reference(x, params)
    assert y.shape == (B, T, N_EMBD)
    # bf16 matmul operands (f32 accumulate) -> loosened tolerance vs f32 ref.
    assert jnp.allclose(y, y_ref, atol=2e-2, rtol=2e-2), "mismatch vs reference"

    print("KERNEL_OK")
</pallas_src>

<mosaic_0001>
module attributes {stable_mosaic.version = 11 : i64} {
  func.func @_ffn_kernel(%arg0: i32, %arg1: memref<128x256xbf16, #tpu.memory_space<vmem>>, %arg2: memref<256x1024xbf16, #tpu.memory_space<vmem>>, %arg3: memref<1x1024xf32, #tpu.memory_space<vmem>>, %arg4: memref<1024x256xbf16, #tpu.memory_space<vmem>>, %arg5: memref<1x256xf32, #tpu.memory_space<vmem>>, %arg6: memref<128x256xf32, #tpu.memory_space<vmem>>) attributes {dimension_semantics = [#tpu.dimension_semantics<parallel>], iteration_bounds = array<i64: 2>, scalar_prefetch = 0 : i64, scratch_operands = 0 : i64, tpu.core_type = #tpu.core_type<tc>, window_params = [{transform_indices = @transform_0, window_bounds = array<i64: 128, 256>}, {pipeline_mode = #tpu.pipeline_mode<synchronous>, transform_indices = @transform_1, window_bounds = array<i64: 256, 1024>}, {pipeline_mode = #tpu.pipeline_mode<synchronous>, transform_indices = @transform_2, window_bounds = array<i64: 1, 1024>}, {pipeline_mode = #tpu.pipeline_mode<synchronous>, transform_indices = @transform_3, window_bounds = array<i64: 1024, 256>}, {pipeline_mode = #tpu.pipeline_mode<synchronous>, transform_indices = @transform_4, window_bounds = array<i64: 1, 256>}, {transform_indices = @transform_5, window_bounds = array<i64: 128, 256>}]} {
    %c0 = arith.constant 0 : index
    %c0_0 = arith.constant 0 : index
    %0 = vector.load %arg1[%c0, %c0_0] : memref<128x256xbf16, #tpu.memory_space<vmem>>, vector<128x256xbf16>
    %cst = arith.constant 0.000000e+00 : f32
    %1 = vector.broadcast %cst : f32 to vector<128x256xf32>
    %c0_1 = arith.constant 0 : index
    %c0_2 = arith.constant 0 : index
    %2 = vector.load %arg2[%c0_1, %c0_2] : memref<256x1024xbf16, #tpu.memory_space<vmem>>, vector<256x256xbf16>
    %cst_3 = arith.constant dense<0.000000e+00> : vector<128x256xf32>
    %3 = tpu.matmul %0, %2, %cst_3 {dimension_numbers = #tpu.dot_dimension_numbers<[1], [0], [0], [1], [0, 0, 1, 1], [], []>} : vector<128x256xbf16>, vector<256x256xbf16>, vector<128x256xf32> -> vector<128x256xf32>
    %c0_4 = arith.constant 0 : index
    %c0_5 = arith.constant 0 : index
    %4 = vector.load %arg3[%c0_4, %c0_5] : memref<1x1024xf32, #tpu.memory_space<vmem>>, vector<1x256xf32>
    %5 = vector.broadcast %4 : vector<1x256xf32> to vector<128x256xf32>
    %6 = arith.addf %3, %5 : vector<128x256xf32>
    %cst_6 = arith.constant 0.000000e+00 : f32
    %7 = vector.broadcast %cst_6 : f32 to vector<128x256xf32>
    %8 = arith.maximumf %6, %7 : vector<128x256xf32>
    %9 = arith.truncf %8 : vector<128x256xf32> to vector<128x256xbf16>
    %c0_7 = arith.constant 0 : index
    %c0_8 = arith.constant 0 : index
    %10 = vector.load %arg4[%c0_7, %c0_8] : memref<1024x256xbf16, #tpu.memory_space<vmem>>, vector<256x256xbf16>
    %cst_9 = arith.constant dense<0.000000e+00> : vector<128x256xf32>
    %11 = tpu.matmul %9, %10, %cst_9 {dimension_numbers = #tpu.dot_dimension_numbers<[1], [0], [0], [1], [0, 0, 1, 1], [], []>} : vector<128x256xbf16>, vector<256x256xbf16>, vector<128x256xf32> -> vector<128x256xf32>
    %12 = arith.addf %1, %11 : vector<128x256xf32>
    %c0_10 = arith.constant 0 : index
    %c256 = arith.constant 256 : index
    %13 = vector.load %arg2[%c0_10, %c256] : memref<256x1024xbf16, #tpu.memory_space<vmem>>, vector<256x256xbf16>
    %cst_11 = arith.constant dense<0.000000e+00> : vector<128x256xf32>
    %14 = tpu.matmul %0, %13, %cst_11 {dimension_numbers = #tpu.dot_dimension_numbers<[1], [0], [0], [1], [0, 0, 1, 1], [], []>} : vector<128x256xbf16>, vector<256x256xbf16>, vector<128x256xf32> -> vector<128x256xf32>
    %c0_12 = arith.constant 0 : index
    %c256_13 = arith.constant 256 : index
    %15 = vector.load %arg3[%c0_12, %c256_13] : memref<1x1024xf32, #tpu.memory_space<vmem>>, vector<1x256xf32>
    %16 = vector.broadcast %15 : vector<1x256xf32> to vector<128x256xf32>
    %17 = arith.addf %14, %16 : vector<128x256xf32>
    %cst_14 = arith.constant 0.000000e+00 : f32
    %18 = vector.broadcast %cst_14 : f32 to vector<128x256xf32>
    %19 = arith.maximumf %17, %18 : vector<128x256xf32>
    %20 = arith.truncf %19 : vector<128x256xf32> to vector<128x256xbf16>
    %c256_15 = arith.constant 256 : index
    %c0_16 = arith.constant 0 : index
    %21 = vector.load %arg4[%c256_15, %c0_16] : memref<1024x256xbf16, #tpu.memory_space<vmem>>, vector<256x256xbf16>
    %cst_17 = arith.constant dense<0.000000e+00> : vector<128x256xf32>
    %22 = tpu.matmul %20, %21, %cst_17 {dimension_numbers = #tpu.dot_dimension_numbers<[1], [0], [0], [1], [0, 0, 1, 1], [], []>} : vector<128x256xbf16>, vector<256x256xbf16>, vector<128x256xf32> -> vector<128x256xf32>
    %23 = arith.addf %12, %22 : vector<128x256xf32>
    %c0_18 = arith.constant 0 : index
    %c512 = arith.constant 512 : index
    %24 = vector.load %arg2[%c0_18, %c512] : memref<256x1024xbf16, #tpu.memory_space<vmem>>, vector<256x256xbf16>
    %cst_19 = arith.constant dense<0.000000e+00> : vector<128x256xf32>
    %25 = tpu.matmul %0, %24, %cst_19 {dimension_numbers = #tpu.dot_dimension_numbers<[1], [0], [0], [1], [0, 0, 1, 1], [], []>} : vector<128x256xbf16>, vector<256x256xbf16>, vector<128x256xf32> -> vector<128x256xf32>
    %c0_20 = arith.constant 0 : index
    %c512_21 = arith.constant 512 : index
    %26 = vector.load %arg3[%c0_20, %c512_21] : memref<1x1024xf32, #tpu.memory_space<vmem>>, vector<1x256xf32>
    %27 = vector.broadcast %26 : vector<1x256xf32> to vector<128x256xf32>
    %28 = arith.addf %25, %27 : vector<128x256xf32>
    %cst_22 = arith.constant 0.000000e+00 : f32
    %29 = vector.broadcast %cst_22 : f32 to vector<128x256xf32>
    %30 = arith.maximumf %28, %29 : vector<128x256xf32>
    %31 = arith.truncf %30 : vector<128x256xf32> to vector<128x256xbf16>
    %c512_23 = arith.constant 512 : index
    %c0_24 = arith.constant 0 : index
    %32 = vector.load %arg4[%c512_23, %c0_24] : memref<1024x256xbf16, #tpu.memory_space<vmem>>, vector<256x256xbf16>
    %cst_25 = arith.constant dense<0.000000e+00> : vector<128x256xf32>
    %33 = tpu.matmul %31, %32, %cst_25 {dimension_numbers = #tpu.dot_dimension_numbers<[1], [0], [0], [1], [0, 0, 1, 1], [], []>} : vector<128x256xbf16>, vector<256x256xbf16>, vector<128x256xf32> -> vector<128x256xf32>
    %34 = arith.addf %23, %33 : vector<128x256xf32>
    %c0_26 = arith.constant 0 : index
    %c768 = arith.constant 768 : index
    %35 = vector.load %arg2[%c0_26, %c768] : memref<256x1024xbf16, #tpu.memory_space<vmem>>, vector<256x256xbf16>
    %cst_27 = arith.constant dense<0.000000e+00> : vector<128x256xf32>
    %36 = tpu.matmul %0, %35, %cst_27 {dimension_numbers = #tpu.dot_dimension_numbers<[1], [0], [0], [1], [0, 0, 1, 1], [], []>} : vector<128x256xbf16>, vector<256x256xbf16>, vector<128x256xf32> -> vector<128x256xf32>
    %c0_28 = arith.constant 0 : index
    %c768_29 = arith.constant 768 : index
    %37 = vector.load %arg3[%c0_28, %c768_29] : memref<1x1024xf32, #tpu.memory_space<vmem>>, vector<1x256xf32>
    %38 = vector.broadcast %37 : vector<1x256xf32> to vector<128x256xf32>
    %39 = arith.addf %36, %38 : vector<128x256xf32>
    %cst_30 = arith.constant 0.000000e+00 : f32
    %40 = vector.broadcast %cst_30 : f32 to vector<128x256xf32>
    %41 = arith.maximumf %39, %40 : vector<128x256xf32>
    %42 = arith.truncf %41 : vector<128x256xf32> to vector<128x256xbf16>
    %c768_31 = arith.constant 768 : index
    %c0_32 = arith.constant 0 : index
    %43 = vector.load %arg4[%c768_31, %c0_32] : memref<1024x256xbf16, #tpu.memory_space<vmem>>, vector<256x256xbf16>
    %cst_33 = arith.constant dense<0.000000e+00> : vector<128x256xf32>
    %44 = tpu.matmul %42, %43, %cst_33 {dimension_numbers = #tpu.dot_dimension_numbers<[1], [0], [0], [1], [0, 0, 1, 1], [], []>} : vector<128x256xbf16>, vector<256x256xbf16>, vector<128x256xf32> -> vector<128x256xf32>
    %45 = arith.addf %34, %44 : vector<128x256xf32>
    %c0_34 = arith.constant 0 : index
    %c0_35 = arith.constant 0 : index
    %46 = vector.load %arg5[%c0_34, %c0_35] : memref<1x256xf32, #tpu.memory_space<vmem>>, vector<1x256xf32>
    %47 = vector.broadcast %46 : vector<1x256xf32> to vector<128x256xf32>
    %48 = arith.addf %45, %47 : vector<128x256xf32>
    %c0_36 = arith.constant 0 : index
    %c0_37 = arith.constant 0 : index
    %49 = vector.load %arg6[%c0_36, %c0_37] : memref<128x256xf32, #tpu.memory_space<vmem>>, vector<128x256xf32>
    tpu.vector_store %arg6[%c0_36, %c0_37], %48 {strides = array<i32>} : memref<128x256xf32, #tpu.memory_space<vmem>>, vector<128x256xf32>,
    return
  }
  func.func @transform_0(%arg0: i32) -> (i32, i32) {
    %c0_i32 = arith.constant 0 : i32
    %c0_i32_0 = arith.constant 0 : i32
    return %arg0, %c0_i32 : i32, i32
  }
  func.func @transform_1(%arg0: i32) -> (i32, i32) {
    %c0_i32 = arith.constant 0 : i32
    %c0_i32_0 = arith.constant 0 : i32
    %c0_i32_1 = arith.constant 0 : i32
    return %c0_i32, %c0_i32_0 : i32, i32
  }
  func.func @transform_2(%arg0: i32) -> (i32, i32) {
    %c0_i32 = arith.constant 0 : i32
    %c0_i32_0 = arith.constant 0 : i32
    %c0_i32_1 = arith.constant 0 : i32
    return %c0_i32, %c0_i32_0 : i32, i32
  }
  func.func @transform_3(%arg0: i32) -> (i32, i32) {
    %c0_i32 = arith.constant 0 : i32
    %c0_i32_0 = arith.constant 0 : i32
    %c0_i32_1 = arith.constant 0 : i32
    return %c0_i32, %c0_i32_0 : i32, i32
  }
  func.func @transform_4(%arg0: i32) -> (i32, i32) {
    %c0_i32 = arith.constant 0 : i32
    %c0_i32_0 = arith.constant 0 : i32
    %c0_i32_1 = arith.constant 0 : i32
    return %c0_i32, %c0_i32_0 : i32, i32
  }
  func.func @transform_5(%arg0: i32) -> (i32, i32) {
    %c0_i32 = arith.constant 0 : i32
    %c0_i32_0 = arith.constant 0 : i32
    return %arg0, %c0_i32 : i32, i32
  }
}

</mosaic_0001>

<bundles_post_ra>
// kernel: tpu_custom_call.1
= control target key start
LH: loop header
LB: loop body
LE: loop exit
PB: predicated region body
PF: predicated region fallthrough
CT: control target
= control target key end

     0   :  { %10 = vsyncpa [#allocation3], 0  ;;  %s4990_s0 = inlined_call_operand.hbm [shape: bf16[256,256], index: 0, kind: input, shape index: {}]   ;;  %s4991_s1 = inlined_call_operand.hbm [shape: bf16[256,1024], index: 1, kind: input, shape index: {}]   ;;  %s4992_s2 = inlined_call_operand.hbm [shape: f32[1,1024], index: 2, kind: input, shape index: {}]   ;;  %s4993_s3 = inlined_call_operand.hbm [shape: bf16[1024,256], index: 3, kind: input, shape index: {}]   ;;  %s4994_s4 = inlined_call_operand.vmem [shape: f32[1,256], index: 4, kind: input, shape index: {}]   ;;  %s4995_s5 = inlined_call_operand.hbm [shape: f32[256,256], index: 5, kind: output, shape index: {}]  }
   0x1   :  { %12 = vsyncpa [#allocation3 + $0x1], 0 }
   0x2   :  { %13 = vsyncpa [#allocation6], 0 }
   0x3   :  { %14 = vsyncpa [#allocation9], 0 }
   0x4   :  { %15 = vsyncpa [#allocation4], 0 }
   0x5   :  { %17 = vsyncpa [#allocation4 + $0x1], 0  ;;  %s4246_s18 = smov 0   ;;  %s4248_s19 = smov 0  }
   0x6   :  { %s4250_s20 = smov 0   ;;  %s4252_s21 = smov 0  }
   0x7 LB: > { %s4267_s22 = sadd.s32 4294967295, %s4203_s21   ;;  %s3321_s23 = sadd.s32 4294967294, %s4203_s21   ;;  %s4203_s21 = sphi %s4252_s21, %s5018_s21   ;;  %s4199_s20 = sphi %s4250_s20, %s5017_s20   ;;  %s4195_s19 = sphi %s4248_s19, %s5016_s19   ;;  %s4191_s18 = sphi %s4246_s18, %s5015_s18  }
   0x8   : > { %p43_p0 = scmp.ne.s32.totalorder %s4195_s19, %s4191_s18  ;;  %p4996_p1 = scmp.eq.s32.totalorder %s4267_s22, 0 }
   0x9   : > { %p157_p3 = scmp.eq.s32.totalorder %s3321_s23, 1  ;;  %p3322_p5 = scmp.ge.s32.totalorder %s4203_s21, 1 }
   0xa   : > { %p4276_p4 = por %p4996_p1, %p43_p0  ;;  %p164_p7 = scmp.lt.s32.totalorder %s4203_s21, 3 }
   0xb   : > { %p4281_p6 = por %p157_p3, %p43_p0  ;;  %s4205_s27 = smov [#allocation5]  }
   0xc   : > { %s4999_s24 = scalar_select %p4276_p4, 1, 0 }
   0xd   : > { %s5000_s25 = scalar_select %p4281_p6, 1, 0 }
   0xe   : > { %p4286_p8 = pnand %p3322_p5, %p164_p7  ;;  %s176_s28 = sshll.u32 %s4205_s27, 4  ;;  %s4290_s28 = int_to_ptr.vmem [resolvable:$true] %s176_s28 }
   0xf   : > { %s4206_s30 = smov [#allocation7]   ;;  %s4207_s7 = smov [#allocation8]  }
  0x10   : > { %s5001_s26 = scalar_select %p4286_p8, 1, 0 }
  0x11   : > { %p3731_p9 = pneg %p4286_p8  ;;  %s190_s6 = sshll.u32 %s4206_s30, 4  ;;  %s4301_s6 = int_to_ptr.vmem [resolvable:$true] %s190_s6 }
  0x12   : > { %s4303_s8 = sshll.u32 %s4207_s7, 4  ;;  %s4015_s11 = scalar_lea.hbm %s4991_s1, 16384  ;;  %s201_s8 = int_to_ptr.vmem [resolvable:$true] %s4303_s8 }
  0x13   : > { %p4297_p11 = pnand %p3731_p9, %p4996_p1  ;;  %p4016_p12 = scmp.ne.s32.totalorder %s4991_s1, %s4015_s11 }
  0x14   : > { %p4022_p5 = scmp.lt.u32.totalorder %s4015_s11, %s4991_s1 }
  0x15   : > { %p4313_p13 = pneg %p4297_p11 }
  0x17   : > { %p4018_p0 = pnand %p4313_p13, %p4016_p12 }
  0x19   : > { %p4019_p3 = pneg %p4018_p0 }
  0x1b   : > { %p4024_p7 = pnand %p4022_p5, %p4019_p3 }
  0x1d   : > { %4027 = shalt.err (!%p4024_p7)
}
  0x1e   : > { %s4028_s17 = scalar_lea.vmem %s4290_s28, 16384  ;;  %p4036_p2 = scmp.lt.s32.totalorder %s4290_s28, %s4290_s28 }
  0x1f   : > { %p4029_p9 = scmp.ne.s32.totalorder %s4290_s28, %s4028_s17  ;;  %p4037_p6 = scmp.lt.s32.totalorder %s4028_s17, %s4028_s17 }
  0x21   : > { %p4031_p10 = pnand %p4029_p9, %p4313_p13  ;;  %p4038_p12 = por %p4037_p6, %p4036_p2 }
  0x23   : > { %p4032_p1 = pneg %p4031_p10 }
  0x25   : > { %p4039_p0 = pnand %p4038_p12, %p4032_p1 }
  0x27   : > { %4042 = shalt.err (!%p4039_p0)
}
  0x28   : > { %s4208_s23 = smov 512   ;;  %s4209_s27 = smov 32  }
  0x29   : > { %3734 = dma.hbm_to_vmem [thread:$0]  (!%p4297_p11), %s4991_s1, 16384, %s4290_s28, [#allocation6], %s4208_s23, %s4208_s23, %s4209_s27  }
  0x2a   : > { %s4043_s11 = scalar_lea.hbm %s4992_s2, 128 }
  0x2b   : > { %p4044_p2 = scmp.ne.s32.totalorder %s4992_s2, %s4043_s11  ;;  %p4050_p10 = scmp.lt.u32.totalorder %s4043_s11, %s4992_s2 }
  0x2d   : > { %p4046_p1 = pnand %p4044_p2, %p4313_p13 }
  0x2f   : > { %p4047_p6 = pneg %p4046_p1 }
  0x31   : > { %p4052_p3 = pnand %p4050_p10, %p4047_p6 }
  0x33   : > { %4055 = shalt.err (!%p4052_p3)
}
  0x34   : > { %s4056_s28 = scalar_lea.vmem %s4301_s6, 128  ;;  %p4064_p12 = scmp.lt.s32.totalorder %s4301_s6, %s4301_s6 }
  0x35   : > { %p4057_p5 = scmp.ne.s32.totalorder %s4301_s6, %s4056_s28  ;;  %p4065_p0 = scmp.lt.s32.totalorder %s4056_s28, %s4056_s28 }
  0x37   : > { %p4059_p7 = pnand %p4057_p5, %p4313_p13  ;;  %p4066_p2 = por %p4065_p0, %p4064_p12 }
  0x39   : > { %p4060_p9 = pneg %p4059_p7 }
  0x3b   : > { %p4067_p1 = pnand %p4066_p2, %p4060_p9 }
  0x3d   : > { %4070 = shalt.err (!%p4067_p1)
}
  0x3e   : > { %3737 = dma.hbm_to_vmem [thread:$0]  (!%p4297_p11), %s4992_s2, 128, %s4301_s6, [#allocation6]  }
  0x3f   : > { %s4071_s7 = scalar_lea.hbm %s4993_s3, 16384 }
  0x40   : > { %p4072_p6 = scmp.ne.s32.totalorder %s4993_s3, %s4071_s7  ;;  %p4078_p5 = scmp.lt.u32.totalorder %s4071_s7, %s4993_s3 }
  0x42   : > { %p4074_p10 = pnand %p4072_p6, %p4313_p13 }
  0x44   : > { %p4075_p3 = pneg %p4074_p10 }
  0x46   : > { %p4080_p7 = pnand %p4078_p5, %p4075_p3 }
  0x48   : > { %4083 = shalt.err (!%p4080_p7)
}
  0x49   : > { %s4084_s13 = scalar_lea.vmem %s201_s8, 16384  ;;  %p4092_p2 = scmp.lt.s32.totalorder %s201_s8, %s201_s8 }
  0x4a   : > { %p4085_p9 = scmp.ne.s32.totalorder %s201_s8, %s4084_s13  ;;  %p4093_p1 = scmp.lt.s32.totalorder %s4084_s13, %s4084_s13 }
  0x4c   : > { %p4087_p12 = pnand %p4085_p9, %p4313_p13  ;;  %p4094_p4 = por %p4093_p1, %p4092_p2 }
  0x4e   : > { %p4088_p0 = pneg %p4087_p12 }
  0x50   : > { %p4095_p8 = pnand %p4094_p4, %p4088_p0 }
  0x52   : > { %4098 = shalt.err (!%p4095_p8)
}
  0x53   : > { %s4210_s6 = smov 128   ;;  %s4211_s14 = smov 8  }
  0x54   : > { %3740 = dma.hbm_to_vmem [thread:$0]  (!%p4297_p11), %s4993_s3, 16384, %s201_s8, [#allocation9], %s4210_s6, %s4210_s6, %s4211_s14  }
  0x55   : > { %s4380_s28 = sadd.s32 1, %s4203_s21   ;;  %s30_s23 = sadd.s32 1, %s4199_s20 }
  0x56   : > { %s27_s17 = ssub.s32 %s4203_s21, %s4380_s28  ;;  %p37_p8 = scmp.ne.s32.totalorder %s4199_s20, %s4195_s19 }
  0x57   : > { %p28_p4 = scmp.eq.s32.totalorder %s27_s17, 0  ;;  %p38_p13 = scmp.eq.s32.totalorder %s4203_s21, 0 }
  0x58   : > { %p3752_p6 = scmp.lt.s32.totalorder %s4203_s21, 2  ;;  %p5004_p3 = scmp.eq.s32.totalorder %s4267_s22, 1 }
  0x59   : > { %s4390_s27 = scalar_select %p28_p4, %s4199_s20, %s30_s23  }
  0x5a   : > { %p39_p10 = por %p38_p13, %p37_p8  ;;  %p4394_p5 = por %p5004_p3, %p37_p8 }
  0x5b   : > { %s217_s30 = sand.u32 1, %s4199_s20   ;;  %s3616_s7 = sshll.u32 %s4203_s21, 11 }
  0x5c   : > { %s3327_s8 = sshll.u32 %s217_s30, 7  ;;  %s4403_s11 = scalar_lea.hbm %s4990_s0, %s3616_s7 }
  0x5d   : > { %s221_s12 = scalar_lea.vmem [#allocation2], %s3327_s8  ;;  %p4405_p11 = pnand %p3752_p6, %p39_p10 }
  0x5e   : > { %s229_s13 = sshll.u32 %s221_s12, 4  ;;  %s4411_s16 = scalar_lea.sflag [#allocation3], %s217_s30  ;;  %s4409_s13 = int_to_ptr.vmem [resolvable:$true] %s229_s13 }
  0x5f   : > { %s4099_s17 = scalar_lea.hbm %s4403_s11, 2048  ;;  %p4101_p9 = pneg %p4405_p11 }
  0x60   : > { %p4100_p7 = scmp.ne.s32.totalorder %s4403_s11, %s4099_s17  ;;  %s4104_s8 = scalar_lea.hbm %s4990_s0, 4096 }
  0x61   : > { %p4105_p2 = scmp.lt.u32.totalorder %s4403_s11, %s4990_s0  ;;  %p4106_p1 = scmp.lt.u32.totalorder %s4104_s8, %s4099_s17 }
  0x62   : > { %p4102_p12 = pnand %p4101_p9, %p4100_p7  ;;  %p4108_p8 = scmp.lt.u32.totalorder %s4099_s17, %s4403_s11 }
  0x63   : > { %p4107_p4 = por %p4106_p1, %p4105_p2 }
  0x64   : > { %p4103_p0 = pneg %p4102_p12 }
  0x65   : > { %p4109_p13 = por %p4108_p8, %p4107_p4 }
  0x67   : > { %p4110_p6 = pnand %p4109_p13, %p4103_p0 }
  0x69   : > { %4113 = shalt.err (!%p4110_p6)
}
  0x6a   : > { %s4114_s30 = scalar_lea.vmem %s4409_s13, 2048  ;;  %s4212_s12 = smov [#allocation2]  }
  0x6b   : > { %p4115_p10 = scmp.ne.s32.totalorder %s4409_s13, %s4114_s30  ;;  %s4119_s23 = sshll.u32 %s4212_s12, 4  ;;  %s4120_s23 = int_to_ptr.vmem [resolvable:$false] %s4119_s23 }
  0x6c   : > { %s4121_s7 = scalar_lea.vmem %s4120_s23, 4096  ;;  %p4122_p12 = scmp.lt.s32.totalorder %s4409_s13, %s4120_s23 }
  0x6d   : > { %p4117_p3 = pnand %p4115_p10, %p4101_p9  ;;  %p4123_p2 = scmp.lt.s32.totalorder %s4121_s7, %s4114_s30 }
  0x6f   : > { %p4118_p7 = pneg %p4117_p3  ;;  %p4124_p1 = por %p4123_p2, %p4122_p12 }
  0x71   : > { %p4125_p4 = pnand %p4124_p1, %p4118_p7 }
  0x73   : > { %4128 = shalt.err (!%p4125_p4)
}
  0x74   : > { %3744 = dma.hbm_to_vmem [thread:$0]  (!%p4405_p11), %s4403_s11, 2048, %s4409_s13, %s4411_s16, %s4210_s6, %s4210_s6, %s4211_s14  }
  0x75   : > { %p5007_p9 = scmp.ne.s32.totalorder %s5001_s26, 0 }
  0x76   : > { %s4445_s17 = sand.u32 (!%p5007_p9), 1, %s4195_s19   ;;  %p5008_p0 = scmp.ne.s32.totalorder (!%p5007_p9), %s4999_s24, 0 }
  0x77   : > { %241 = sbr.rel (%p5007_p9) target bundleno = 968 (0x3c8), region = 40  ;;  %s3332_s8 = sshll.u32 (!%p5007_p9), %s4445_s17, 7 }
  0x78   : > { %s244_s9 = scalar_lea.sflag (!%p5007_p9), [#allocation3], %s4445_s17  ;;  %s4449_s10 = scalar_lea.vmem (!%p5007_p9), [#allocation2], %s3332_s8 }
  0x7e   : > { %4174 = dma.done.wait (%p5008_p0), %s244_s9, 2048  }
  0x7f   : > { %4176 = vsyncadd (%p5008_p0), %s244_s9, 4294965248  ;;  %p5009_p11 = scmp.eq.s32.totalorder %s4267_s22, 0 }
  0x81   : > { %4178 = dma.done.wait (%p5009_p11), [#allocation6], 16512   ;;  %p5010_p8 = pmov %p5009_p11 }
  0x83   : > { %4180 = vsyncadd (%p5010_p8), [#allocation6], 4294950784  ;;  %p5011_p13 = pmov %p5010_p8 }
  0x84   : > { %p5012_p6 = pmov %p5010_p8 }
  0x85   : > { %4182 = dma.done.wait (%p5011_p13), [#allocation9], 16384  }
  0x86   : > { %4184 = vsyncadd (%p5012_p6), [#allocation9], 4294950912  ;;  %v304_v0 = vld [vmem:[#allocation5] sm:$0xff]  ;;  %v781_v63 = vld [vmem:[#allocation5 + $0x8] sm:$0xff]  ;;  %s3336_s6 = sshll.u32 %s4445_s17, 8  ;;  %s3618_s11 = sshll.u32 %s4267_s22, 12 }
  0x87   : > { %v305_v1 = vld [vmem:[#allocation5 + $0x20] sm:$0xff]  ;;  %s4875_s14 = scalar_lea.vmem [#allocation10], %s3336_s6  ;;  %s4940_s30 = scalar_lea.hbm %s4995_s5, %s3618_s11 }
  0x88   : > { %v306_v2 = vld [vmem:[#allocation5 + $0x40] sm:$0xff]  ;;  %v3354_v3 = vcombine.high %v304_v0, %v305_v1  ;;  %v3353_v4 = vcombine.low %v304_v0, %v305_v1  ;;  %v782_v0 = vld [vmem:[#allocation5 + $0x28] sm:$0xff]  ;;  %s3219_s13 = sshll.u32 %s4875_s14, 4  ;;  %s3205_s22 = scalar_lea.sflag [#allocation4], %s4445_s17  ;;  %s4942_s13 = int_to_ptr.vmem [resolvable:$true] %s3219_s13 }
  0x89   : > { %v307_v5 = vld [vmem:[#allocation5 + $0x60] sm:$0xff]  ;;  %s4129_s12 = scalar_lea.vmem %s4942_s13, 4096  ;;  %s4213_s23 = smov [#allocation10]  }
  0x8a   : > { %v3356_v6 = vcombine.high %v306_v2, %v307_v5  ;;  %v308_v7 = vld [vmem:[#allocation5 + $0x80] sm:$0xff]  ;;  %588 = vmatprep.subr.bf16.mxu1 %v3354_v3  ;;  %v3355_v9 = vcombine.low %v306_v2, %v307_v5  ;;  %v3386_v3 = vcombine.high %v781_v63, %v782_v0  ;;  %v784_v5 = vld [vmem:[#allocation5 + $0x68] sm:$0xff]  ;;  %p4130_p10 = scmp.ne.s32.totalorder %s4942_s13, %s4129_s12  ;;  %s4133_s7 = sshll.u32 %s4213_s23, 4  ;;  %s4134_s7 = int_to_ptr.vmem [resolvable:$false] %s4133_s7 }
  0x8b   : > { %v309_v8 = vld [vmem:[#allocation5 + $0xa0] sm:$0xff]  ;;  %589 = vmatpush1.bf16.msra.mxu1 %v3353_v4  ;;  %v783_v4 = vld [vmem:[#allocation5 + $0x48] sm:$0xff]  ;;  %s4135_s8 = scalar_lea.vmem %s4134_s7, 8192  ;;  %p4136_p12 = scmp.lt.s32.totalorder %s4942_s13, %s4134_s7 }
  0x8c   : > { %590 = vmatprep.subr.bf16.mxu1 %v3356_v6  ;;  %v3358_v10 = vcombine.high %v308_v7, %v309_v8  ;;  %v310_v11 = vld [vmem:[#allocation5 + $0xc0] sm:$0xff]  ;;  %v3357_v13 = vcombine.low %v308_v7, %v309_v8  ;;  %v3385_v7 = vcombine.low %v781_v63, %v782_v0  ;;  %v4471_v8 = vld [vmem:[%s4449_s10 + $0x14] ss:$8 sps:$4 sm:$0xff]   ;;  %p4131_p3 = pnand %p4130_p10, %p4394_p5  ;;  %p4137_p2 = scmp.lt.s32.totalorder %s4135_s8, %s4129_s12 }
  0x8d   : > { %v311_v12 = vld [vmem:[#allocation5 + $0xe0] sm:$0xff] }
  0x8e   : > { %v3360_v14 = vcombine.high %v310_v11, %v311_v12  ;;  %v312_v15 = vld [vmem:[#allocation5 + $0x100] sm:$0xff]  ;;  %v3359_v18 = vcombine.low %v310_v11, %v311_v12  ;;  %v786_v11 = vld [vmem:[#allocation5 + $0xa8] sm:$0xff]  ;;  %v3387_v12 = vcombine.low %v783_v4, %v784_v5  ;;  %p4132_p7 = pneg %p4131_p3  ;;  %p4138_p1 = por %p4137_p2, %p4136_p12 }
  0x8f   : > { %591 = vmatpush1.bf16.msra.mxu1 %v3355_v9  ;;  %v313_v16 = vld [vmem:[#allocation5 + $0x120] sm:$0xff]  ;;  %v3388_v9 = vcombine.high %v783_v4, %v784_v5  ;;  %v4519_v5 = vld [vmem:[%s4449_s10 + $0x74] ss:$8 sps:$4 sm:$0xff]  }
  0x90   : > { %592 = vmatprep.subr.bf16.mxu1 %v3358_v10  ;;  %v4464_v17 = vld [vmem:[%s4449_s10 + $0x4] ss:$8 sps:$4 sm:$0xff]   ;;  %v3362_v19 = vcombine.high %v312_v15, %v313_v16  ;;  %v3361_v22 = vcombine.low %v312_v15, %v313_v16  ;;  %v4468_v6 = vld [vmem:[%s4449_s10] ss:$8 sps:$4 sm:$0xff]   ;;  %p4139_p4 = pnand %p4138_p1, %p4132_p7 }
  0x91   : > { %620 = vmatprep.mubr.bf16.mxu1 %v4464_v17  ;;  %v314_v20 = vld [vmem:[#allocation5 + $0x140] sm:$0xff]  ;;  %v785_v10 = vld [vmem:[#allocation5 + $0x88] sm:$0xff] }
  0x92   : > { %v315_v21 = vld [vmem:[#allocation5 + $0x160] sm:$0xff]  ;;  %v787_v15 = vld [vmem:[#allocation5 + $0xc8] sm:$0xff] }
  0x93   : > { %593 = vmatpush1.bf16.msra.mxu1 %v3357_v13  ;;  %v3364_v23 = vcombine.high %v314_v20, %v315_v21  ;;  %v316_v24 = vld [vmem:[#allocation5 + $0x180] sm:$0xff]  ;;  %v3363_v26 = vcombine.low %v314_v20, %v315_v21  ;;  %v4476_v13 = vld [vmem:[%s4449_s10 + $0x10] ss:$8 sps:$4 sm:$0xff]   ;;  %v788_v16 = vld [vmem:[#allocation5 + $0xe8] sm:$0xff] }
  0x94   : > { %594 = vmatprep.subr.bf16.mxu1 %v3360_v14  ;;  %v317_v25 = vld [vmem:[#allocation5 + $0x1a0] sm:$0xff]  ;;  %v3390_v14 = vcombine.high %v785_v10, %v786_v11  ;;  %v789_v20 = vld [vmem:[#allocation5 + $0x108] sm:$0xff] }
  0x95   : > { %v3366_v27 = vcombine.high %v316_v24, %v317_v25  ;;  %v318_v28 = vld [vmem:[#allocation5 + $0x1c0] sm:$0xff]  ;;  %v3365_v30 = vcombine.low %v316_v24, %v317_v25  ;;  %v790_v21 = vld [vmem:[#allocation5 + $0x128] sm:$0xff] }
  0x96   : > { %v319_v29 = vld [vmem:[#allocation5 + $0x1e0] sm:$0xff]  ;;  %v791_v24 = vld [vmem:[#allocation5 + $0x148] sm:$0xff] }
  0x97   : > { %595 = vmatpush1.bf16.msra.mxu1 %v3359_v18  ;;  %v3368_v31 = vcombine.high %v318_v28, %v319_v29  ;;  %v320_v32 = vld [vmem:[#allocation5 + $0x200] sm:$0xff]  ;;  %v3367_v34 = vcombine.low %v318_v28, %v319_v29  ;;  %v792_v25 = vld [vmem:[#allocation5 + $0x168] sm:$0xff]  ;;  %v4487_v28 = vld [vmem:[%s4449_s10 + $0x34] ss:$8 sps:$4 sm:$0xff]   ;;  %v3393_v29 = vcombine.low %v789_v20, %v790_v21 }
  0x98   : > { %596 = vmatprep.subr.bf16.mxu1 %v3362_v19  ;;  %v321_v33 = vld [vmem:[#allocation5 + $0x220] sm:$0xff]  ;;  %v3389_v19 = vcombine.low %v785_v10, %v786_v11  ;;  %v810_v10 = vld [vmem:[#allocation5 + $0x3a8] sm:$0xff] }
  0x99   : > { %v3370_v35 = vcombine.high %v320_v32, %v321_v33  ;;  %v322_v36 = vld [vmem:[#allocation5 + $0x240] sm:$0xff]  ;;  %v3369_v38 = vcombine.low %v320_v32, %v321_v33  ;;  %v3396_v32 = vcombine.high %v791_v24, %v792_v25  ;;  %v3395_v33 = vcombine.low %v791_v24, %v792_v25  ;;  %v1726_v25 = vld [vmem:[#allocation5 + $0x50] sm:$0xff] }
  0x9a   : > { %v323_v37 = vld [vmem:[#allocation5 + $0x260] sm:$0xff] }
  0x9b   : > { %597 = vmatpush1.bf16.msra.mxu1 %v3361_v22  ;;  %v324_v39 = vld [vmem:[#allocation5 + $0x280] sm:$0xff]  ;;  %v3372_v41 = vcombine.high %v322_v36, %v323_v37  ;;  %v3371_v42 = vcombine.low %v322_v36, %v323_v37  ;;  %v3392_v22 = vcombine.high %v787_v15, %v788_v16  ;;  %v796_v37 = vld [vmem:[#allocation5 + $0x1e8] sm:$0xff] }
  0x9c   : > { %598 = vmatprep.subr.bf16.mxu1 %v3364_v23  ;;  %v325_v40 = vld [vmem:[#allocation5 + $0x2a0] sm:$0xff]  ;;  %v3391_v23 = vcombine.low %v787_v15, %v788_v16  ;;  %v812_v15 = vld [vmem:[#allocation5 + $0x3e8] sm:$0xff]  ;;  %v4524_v16 = vld [vmem:[%s4449_s10 + $0x70] ss:$8 sps:$4 sm:$0xff]  }
  0x9d   : > { %v326_v43 = vld [vmem:[#allocation5 + $0x2c0] sm:$0xff]  ;;  %v3374_v45 = vcombine.high %v324_v39, %v325_v40  ;;  %v3373_v46 = vcombine.low %v324_v39, %v325_v40 }
  0x9e   : > { %v327_v44 = vld [vmem:[#allocation5 + $0x2e0] sm:$0xff] }
  0x9f   : > { %599 = vmatpush1.bf16.msra.mxu1 %v3363_v26  ;;  %v328_v47 = vld [vmem:[#allocation5 + $0x300] sm:$0xff]  ;;  %v3376_v49 = vcombine.high %v326_v43, %v327_v44  ;;  %v3375_v50 = vcombine.low %v326_v43, %v327_v44 }
  0xa0   : > { %600 = vmatprep.subr.bf16.mxu1 %v3366_v27  ;;  %v329_v48 = vld [vmem:[#allocation5 + $0x320] sm:$0xff]  ;;  %v3394_v27 = vcombine.high %v789_v20, %v790_v21  ;;  %v1724_v21 = vld [vmem:[#allocation5 + $0x10] sm:$0xff] }
  0xa1   : > { %v330_v51 = vld [vmem:[#allocation5 + $0x340] sm:$0xff]  ;;  %v3378_v53 = vcombine.high %v328_v47, %v329_v48  ;;  %v3377_v54 = vcombine.low %v328_v47, %v329_v48 }
  0xa2   : > { %v331_v52 = vld [vmem:[#allocation5 + $0x360] sm:$0xff] }
  0xa3   : > { %601 = vmatpush1.bf16.msra.mxu1 %v3365_v30  ;;  %v332_v55 = vld [vmem:[#allocation5 + $0x380] sm:$0xff]  ;;  %v3380_v57 = vcombine.high %v330_v51, %v331_v52  ;;  %v3379_v58 = vcombine.low %v330_v51, %v331_v52  ;;  %v793_v30 = vld [vmem:[#allocation5 + $0x188] sm:$0xff] }
  0xa4   : > { %602 = vmatprep.subr.bf16.mxu1 %v3368_v31  ;;  %v333_v56 = vld [vmem:[#allocation5 + $0x3a0] sm:$0xff]  ;;  %v794_v31 = vld [vmem:[#allocation5 + $0x1a8] sm:$0xff] }
  0xa5   : > { %v334_v59 = vld [vmem:[#allocation5 + $0x3c0] sm:$0xff]  ;;  %v3382_v61 = vcombine.high %v332_v55, %v333_v56  ;;  %v3381_v62 = vcombine.low %v332_v55, %v333_v56  ;;  %v3398_v36 = vcombine.high %v793_v30, %v794_v31  ;;  %v3397_v39 = vcombine.low %v793_v30, %v794_v31  ;;  %v801_v51 = vld [vmem:[#allocation5 + $0x288] sm:$0xff]  ;;  %v1728_v31 = vld [vmem:[#allocation5 + $0x90] sm:$0xff] }
  0xa6   : > { %v335_v60 = vld [vmem:[#allocation5 + $0x3e0] sm:$0xff]  ;;  %v802_v52 = vld [vmem:[#allocation5 + $0x2a8] sm:$0xff] }
  0xa7   : > { %603 = vmatpush1.bf16.msra.mxu1 %v3367_v34  ;;  %v3384_v1 = vcombine.high %v334_v59, %v335_v60  ;;  %v3383_v2 = vcombine.low %v334_v59, %v335_v60  ;;  %v4479_v18 = vld [vmem:[%s4449_s10 + $0x24] ss:$8 sps:$4 sm:$0xff]   ;;  %v4484_v26 = vld [vmem:[%s4449_s10 + $0x20] ss:$8 sps:$4 sm:$0xff]  }
  0xa8   : > { %604 = vmatprep.subr.bf16.mxu1 %v3370_v35  ;;  %v795_v34 = vld [vmem:[#allocation5 + $0x1c8] sm:$0xff]  ;;  %v4492_v35 = vld [vmem:[%s4449_s10 + $0x30] ss:$8 sps:$4 sm:$0xff]  }
  0xa9   : > { %v3400_v40 = vcombine.high %v795_v34, %v796_v37  ;;  %v3399_v43 = vcombine.low %v795_v34, %v796_v37  ;;  %v4500_v47 = vld [vmem:[%s4449_s10 + $0x40] ss:$8 sps:$4 sm:$0xff]   ;;  %v4511_v59 = vld [vmem:[%s4449_s10 + $0x64] ss:$8 sps:$4 sm:$0xff]   ;;  %v1731_v37 = vld [vmem:[#allocation5 + $0xf0] sm:$0xff] }
  0xaa   : > { %v803_v55 = vld [vmem:[#allocation5 + $0x2c8] sm:$0xff] }
  0xab   : > { %605 = vmatpush1.bf16.msra.mxu1 %v3369_v38  ;;  %v4495_v38 = vld [vmem:[%s4449_s10 + $0x44] ss:$8 sps:$4 sm:$0xff]  }
  0xac   : > { %606 = vmatprep.subr.bf16.mxu1 %v3372_v41  ;;  %v797_v41 = vld [vmem:[#allocation5 + $0x208] sm:$0xff] }
  0xad   : > { %v804_v56 = vld [vmem:[#allocation5 + $0x2e8] sm:$0xff] }
  0xae   : > { %v3408_v60 = vcombine.high %v803_v55, %v804_v56  ;;  %v3407_v63 = vcombine.low %v803_v55, %v804_v56  ;;  %v1738_v55 = vld [vmem:[#allocation5 + $0x1d0] sm:$0xff] }
  0xaf   : > { %607 = vmatpush1.bf16.msra.mxu1 %v3371_v42  ;;  %v798_v42 = vld [vmem:[#allocation5 + $0x228] sm:$0xff]  ;;  %v1739_v56 = vld [vmem:[#allocation5 + $0x1f0] sm:$0xff] }
  0xb0   : > { %608 = vmatprep.subr.bf16.mxu1 %v3374_v45  ;;  %v3402_v44 = vcombine.high %v797_v41, %v798_v42  ;;  %v799_v45 = vld [vmem:[#allocation5 + $0x248] sm:$0xff]  ;;  %v3401_v48 = vcombine.low %v797_v41, %v798_v42  ;;  %v1732_v41 = vld [vmem:[#allocation5 + $0x110] sm:$0xff] }
  0xb1   : > { %v1733_v42 = vld [vmem:[#allocation5 + $0x130] sm:$0xff] }
  0xb3   : > { %609 = vmatpush1.bf16.msra.mxu1 %v3373_v46  ;;  %v800_v46 = vld [vmem:[#allocation5 + $0x268] sm:$0xff] }
  0xb4   : > { %610 = vmatprep.subr.bf16.mxu1 %v3376_v49  ;;  %v4503_v49 = vld [vmem:[%s4449_s10 + $0x54] ss:$8 sps:$4 sm:$0xff]  }
  0xb7   : > { %611 = vmatpush1.bf16.msra.mxu1 %v3375_v50  ;;  %v3404_v50 = vcombine.high %v799_v45, %v800_v46 }
  0xb8   : > { %612 = vmatprep.subr.bf16.mxu1 %v3378_v53  ;;  %v3403_v53 = vcombine.low %v799_v45, %v800_v46  ;;  %v1734_v45 = vld [vmem:[#allocation5 + $0x150] sm:$0xff] }
  0xb9   : > { %v1735_v46 = vld [vmem:[#allocation5 + $0x170] sm:$0xff] }
  0xbb   : > { %613 = vmatpush1.bf16.msra.mxu1 %v3377_v54  ;;  %v3406_v54 = vcombine.high %v801_v51, %v802_v52 }
  0xbc   : > { %614 = vmatprep.subr.bf16.mxu1 %v3380_v57  ;;  %v4508_v57 = vld [vmem:[%s4449_s10 + $0x50] ss:$8 sps:$4 sm:$0xff]  }
  0xbf   : > { %615 = vmatpush1.bf16.msra.mxu1 %v3379_v58  ;;  %v3405_v58 = vcombine.low %v801_v51, %v802_v52  ;;  %v1736_v51 = vld [vmem:[#allocation5 + $0x190] sm:$0xff] }
  0xc0   : > { %616 = vmatprep.subr.bf16.mxu1 %v3382_v61  ;;  %v805_v61 = vld [vmem:[#allocation5 + $0x308] sm:$0xff]  ;;  %v1737_v52 = vld [vmem:[#allocation5 + $0x1b0] sm:$0xff] }
  0xc3   : > { %617 = vmatpush1.bf16.msra.mxu1 %v3381_v62  ;;  %v806_v62 = vld [vmem:[#allocation5 + $0x328] sm:$0xff] }
  0xc4   : > { %618 = vmatprep.subr.bf16.mxu1 %v3384_v1  ;;  %v3410_v0 = vcombine.high %v805_v61, %v806_v62  ;;  %v807_v1 = vld [vmem:[#allocation5 + $0x348] sm:$0xff]  ;;  %v3409_v4 = vcombine.low %v805_v61, %v806_v62  ;;  %v1740_v61 = vld [vmem:[#allocation5 + $0x210] sm:$0xff] }
  0xc5   : > { %v1741_v62 = vld [vmem:[#allocation5 + $0x230] sm:$0xff] }
  0xc7   : > { %619 = vmatpush1.bf16.msra.mxu1 %v3383_v2  ;;  %v808_v2 = vld [vmem:[#allocation5 + $0x368] sm:$0xff] }
  0xc8   : > { %985 = vmatprep.subr.bf16.mxu1 %v3386_v3  ;;  %v4516_v3 = vld [vmem:[%s4449_s10 + $0x60] ss:$8 sps:$4 sm:$0xff]   ;;  %v3411_v11 = vcombine.low %v807_v1, %v808_v2 }
  0xca   : > { %621 = vmatmul.mubr.bf16.vlgmr.msra.gmra.mrb[0].mxu1 %v4468_v6 }
  0xcb   : > { %986 = vmatpush1.bf16.msra.mxu1 %v3385_v7  ;;  %630 = vmatprep.mubr.bf16.mxu1 %v4471_v8  ;;  %v3412_v7 = vcombine.high %v807_v1, %v808_v2  ;;  %v1742_v1 = vld [vmem:[#allocation5 + $0x250] sm:$0xff] }
  0xcc   : > { %987 = vmatprep.subr.bf16.mxu1 %v3388_v9  ;;  %v809_v9 = vld [vmem:[#allocation5 + $0x388] sm:$0xff]  ;;  %v1743_v2 = vld [vmem:[#allocation5 + $0x270] sm:$0xff] }
  0xcf   : > { %988 = vmatpush1.bf16.msra.mxu1 %v3387_v12  ;;  %v3414_v12 = vcombine.high %v809_v9, %v810_v10 }
  0xd0   : > { %989 = vmatprep.subr.bf16.mxu1 %v3390_v14  ;;  %v811_v14 = vld [vmem:[#allocation5 + $0x3c8] sm:$0xff] }
  0xd1   : > { %v3416_v20 = vcombine.high %v811_v14, %v812_v15 }
  0xd2   : > { %631 = vmatmul.mubr.bf16.gmra.mrb[4].mxu1 %v4476_v13 }
  0xd3   : > { %990 = vmatpush1.bf16.msra.mxu1 %v3389_v19  ;;  %640 = vmatprep.mubr.bf16.mxu1 %v4479_v18  ;;  %v3413_v19 = vcombine.low %v809_v9, %v810_v10  ;;  %v3824_v9 = vld [vmem:[#allocation8 + $0x100] ss:$8 sps:$4 sm:$0xff]   ;;  %v3500_v10 = vcombine.high %v1742_v1, %v1743_v2 }
  0xd4   : > { %991 = vmatprep.subr.bf16.mxu1 %v3392_v22  ;;  %v1725_v22 = vld [vmem:[#allocation5 + $0x30] sm:$0xff] }
  0xd5   : > { %v3482_v24 = vcombine.high %v1724_v21, %v1725_v22 }
  0xd7   : > { %992 = vmatpush1.bf16.msra.mxu1 %v3391_v23  ;;  %v3415_v23 = vcombine.low %v811_v14, %v812_v15  ;;  %v3825_v14 = vld [vmem:[#allocation8 + $0x114] ss:$8 sps:$4 sm:$0xff]   ;;  %v3499_v15 = vcombine.low %v1742_v1, %v1743_v2 }
  0xd8   : > { %993 = vmatprep.subr.bf16.mxu1 %v3394_v27  ;;  %v1727_v27 = vld [vmem:[#allocation5 + $0x70] sm:$0xff]  ;;  %v2428_v1 = vld [vmem:[#allocation5 + $0x58] sm:$0xff] }
  0xd9   : > { %v3484_v30 = vcombine.high %v1726_v25, %v1727_v27  ;;  %v2429_v2 = vld [vmem:[#allocation5 + $0x78] sm:$0xff] }
  0xda   : > { %641 = vmatmul.mubr.bf16.gmra.mrb[8].mxu1 %v4484_v26 }
  0xdb   : > { %994 = vmatpush1.bf16.msra.mxu1 %v3393_v29  ;;  %650 = vmatprep.mubr.bf16.mxu1 %v4487_v28  ;;  %v3481_v29 = vcombine.low %v1724_v21, %v1725_v22  ;;  %v1746_v21 = vld [vmem:[#allocation5 + $0x2d0] sm:$0xff] }
  0xdc   : > { %995 = vmatprep.subr.bf16.mxu1 %v3396_v32  ;;  %v1729_v32 = vld [vmem:[#allocation5 + $0xb0] sm:$0xff] }
  0xdd   : > { %v3486_v34 = vcombine.high %v1728_v31, %v1729_v32  ;;  %v1747_v22 = vld [vmem:[#allocation5 + $0x2f0] sm:$0xff] }
  0xdf   : > { %996 = vmatpush1.bf16.msra.mxu1 %v3395_v33  ;;  %v3483_v33 = vcombine.low %v1726_v25, %v1727_v27  ;;  %v3830_v25 = vld [vmem:[#allocation8 + $0x120] ss:$8 sps:$4 sm:$0xff]   ;;  %v3504_v27 = vcombine.high %v1746_v21, %v1747_v22 }
  0xe0   : > { %997 = vmatprep.subr.bf16.mxu1 %v3398_v36  ;;  %v1730_v36 = vld [vmem:[#allocation5 + $0xd0] sm:$0xff] }
  0xe2   : > { %651 = vmatmul.mubr.bf16.gmra.mrb[12].mxu1 %v4492_v35 }
  0xe3   : > { %998 = vmatpush1.bf16.msra.mxu1 %v3397_v39  ;;  %660 = vmatprep.mubr.bf16.mxu1 %v4495_v38  ;;  %v3485_v39 = vcombine.low %v1728_v31, %v1729_v32  ;;  %v3831_v31 = vld [vmem:[#allocation8 + $0x134] ss:$8 sps:$4 sm:$0xff]   ;;  %v3503_v32 = vcombine.low %v1746_v21, %v1747_v22  ;;  %v3852_v22 = vld [vmem:[#allocation8 + $0x1a4] ss:$8 sps:$4 sm:$0xff]  }
  0xe4   : > { %999 = vmatprep.subr.bf16.mxu1 %v3400_v40  ;;  %v3488_v40 = vcombine.high %v1730_v36, %v1731_v37  ;;  %v2433_v21 = vld [vmem:[#allocation5 + $0xf8] sm:$0xff] }
  0xe7   : > { %1000 = vmatpush1.bf16.msra.mxu1 %v3399_v43  ;;  %v3487_v43 = vcombine.low %v1730_v36, %v1731_v37  ;;  %v1750_v36 = vld [vmem:[#allocation5 + $0x350] sm:$0xff] }
  0xe8   : > { %1001 = vmatprep.subr.bf16.mxu1 %v3402_v44  ;;  %v3490_v44 = vcombine.high %v1732_v41, %v1733_v42  ;;  %v1751_v37 = vld [vmem:[#allocation5 + $0x370] sm:$0xff] }
  0xea   : > { %661 = vmatmul.mubr.bf16.gmra.mrb[16].mxu1 %v4500_v47 }
  0xeb   : > { %1002 = vmatpush1.bf16.msra.mxu1 %v3401_v48  ;;  %670 = vmatprep.mubr.bf16.mxu1 %v4503_v49  ;;  %v3489_v48 = vcombine.low %v1732_v41, %v1733_v42  ;;  %v3836_v41 = vld [vmem:[#allocation8 + $0x140] ss:$8 sps:$4 sm:$0xff]   ;;  %v3508_v42 = vcombine.high %v1750_v36, %v1751_v37 }
  0xec   : > { %1003 = vmatprep.subr.bf16.mxu1 %v3404_v50  ;;  %v3492_v50 = vcombine.high %v1734_v45, %v1735_v46 }
  0xef   : > { %1004 = vmatpush1.bf16.msra.mxu1 %v3403_v53  ;;  %v3491_v53 = vcombine.low %v1734_v45, %v1735_v46  ;;  %v3837_v45 = vld [vmem:[#allocation8 + $0x154] ss:$8 sps:$4 sm:$0xff]   ;;  %v3507_v46 = vcombine.low %v1750_v36, %v1751_v37  ;;  %v3858_v37 = vld [vmem:[#allocation8 + $0x1c4] ss:$8 sps:$4 sm:$0xff]  }
  0xf0   : > { %1005 = vmatprep.subr.bf16.mxu1 %v3406_v54  ;;  %v3494_v54 = vcombine.high %v1736_v51, %v1737_v52  ;;  %v2437_v36 = vld [vmem:[#allocation5 + $0x178] sm:$0xff] }
  0xf2   : > { %671 = vmatmul.mubr.bf16.gmra.mrb[20].mxu1 %v4508_v57 }
  0xf3   : > { %1006 = vmatpush1.bf16.msra.mxu1 %v3405_v58  ;;  %680 = vmatprep.mubr.bf16.mxu1 %v4511_v59  ;;  %v3493_v58 = vcombine.low %v1736_v51, %v1737_v52  ;;  %v1754_v51 = vld [vmem:[#allocation5 + $0x3d0] sm:$0xff] }
  0xf4   : > { %1007 = vmatprep.subr.bf16.mxu1 %v3408_v60  ;;  %v3496_v60 = vcombine.high %v1738_v55, %v1739_v56  ;;  %v1755_v52 = vld [vmem:[#allocation5 + $0x3f0] sm:$0xff] }
  0xf7   : > { %1008 = vmatpush1.bf16.msra.mxu1 %v3407_v63  ;;  %v3495_v63 = vcombine.low %v1738_v55, %v1739_v56  ;;  %v3842_v55 = vld [vmem:[#allocation8 + $0x160] ss:$8 sps:$4 sm:$0xff]   ;;  %v3512_v56 = vcombine.high %v1754_v51, %v1755_v52 }
  0xf8   : > { %1009 = vmatprep.subr.bf16.mxu1 %v3410_v0  ;;  %v3498_v0 = vcombine.high %v1740_v61, %v1741_v62 }
  0xfa   : > { %681 = vmatmul.mubr.bf16.gmra.mrb[24].mxu1 %v4516_v3 }
  0xfb   : > { %1010 = vmatpush1.bf16.msra.mxu1 %v3409_v4  ;;  %690 = vmatprep.mubr.bf16.mxu1 %v4519_v5  ;;  %v3822_v4 = vld [vmem:[#allocation8 + $0x104] ss:$8 sps:$4 sm:$0xff]  }
  0xfc   : > { %1011 = vmatprep.subr.bf16.mxu1 %v3412_v7  ;;  %v3497_v7 = vcombine.low %v1740_v61, %v1741_v62  ;;  %1338 = vmatprep.subr.bf16.mxu0 %v3822_v4  ;;  %v3843_v61 = vld [vmem:[#allocation8 + $0x174] ss:$8 sps:$4 sm:$0xff]   ;;  %v3511_v62 = vcombine.low %v1754_v51, %v1755_v52  ;;  %v3846_v4 = vld [vmem:[#allocation8 + $0x184] ss:$8 sps:$4 sm:$0xff]  }
  0xfd   : > { %1339 = vmatpush1.bf16.msra.mxu0 %v3824_v9  ;;  %v3848_v9 = vld [vmem:[#allocation8 + $0x180] ss:$8 sps:$4 sm:$0xff]   ;;  %v2441_v51 = vld [vmem:[#allocation5 + $0x1f8] sm:$0xff]  ;;  %v3864_v52 = vld [vmem:[#allocation8 + $0x1e4] ss:$8 sps:$4 sm:$0xff]  }
  0xfe   : > { %1340 = vmatprep.subr.bf16.mxu0 %v3825_v14  ;;  %v3547_v14 = vcombine.low %v2428_v1, %v2429_v2 }
  0xff   : > { %1012 = vmatpush1.bf16.msra.mxu1 %v3411_v11  ;;  %v1744_v11 = vld [vmem:[#allocation5 + $0x290] sm:$0xff] }
 0x100   : > { %1013 = vmatprep.subr.bf16.mxu1 %v3414_v12  ;;  %v1745_v12 = vld [vmem:[#allocation5 + $0x2b0] sm:$0xff] }
 0x102   : > { %691 = vmatmul.mubr.bf16.gmra.mrb[28].mxu1 %v4524_v16 }
 0x103   : > { %1014 = vmatpush1.bf16.msra.mxu1 %v3413_v19  ;;  %1017 = vmatprep.mubr.bf16.mxu1 %v4464_v17  ;;  %v3827_v19 = vld [vmem:[#allocation8 + $0x110] ss:$8 sps:$4 sm:$0xff]  }
 0x104   : > { %1015 = vmatprep.subr.bf16.mxu1 %v3416_v20  ;;  %v3502_v20 = vcombine.high %v1744_v11, %v1745_v12  ;;  %1341 = vmatpush1.bf16.msra.mxu0 %v3827_v19 }
 0x107   : > { %1016 = vmatpush1.bf16.msra.mxu1 %v3415_v23  ;;  %v3828_v23 = vld [vmem:[#allocation8 + $0x124] ss:$8 sps:$4 sm:$0xff]  }
 0x108   : > { %1928 = vmatprep.subr.bf16.mxu1 %v3482_v24  ;;  %v3501_v24 = vcombine.low %v1744_v11, %v1745_v12  ;;  %1342 = vmatprep.subr.bf16.mxu0 %v3828_v23  ;;  %v2430_v11 = vld [vmem:[#allocation5 + $0x98] sm:$0xff] }
 0x109   : > { %1343 = vmatpush1.bf16.msra.mxu0 %v3830_v25  ;;  %v2431_v12 = vld [vmem:[#allocation5 + $0xb8] sm:$0xff] }
 0x10a   : > { %1018 = vmatmul.mubr.bf16.vlgmr.msra.gmra.mrb[32].mxu1 %v4468_v6  ;;  %1344 = vmatprep.subr.bf16.mxu0 %v3831_v31  ;;  %v3550_v19 = vcombine.high %v2430_v11, %v2431_v12  ;;  %v3549_v23 = vcombine.low %v2430_v11, %v2431_v12 }
 0x10b   : > { %1027 = vmatprep.mubr.bf16.mxu1 %v4471_v8  ;;  %1929 = vmatpush1.bf16.msra.mxu1 %v3481_v29  ;;  %v1748_v29 = vld [vmem:[#allocation5 + $0x310] sm:$0xff] }
 0x10c   : > { %1930 = vmatprep.subr.bf16.mxu1 %v3484_v30  ;;  %v1749_v30 = vld [vmem:[#allocation5 + $0x330] sm:$0xff] }
 0x10f   : > { %1931 = vmatpush1.bf16.msra.mxu1 %v3483_v33  ;;  %v3833_v33 = vld [vmem:[#allocation8 + $0x130] ss:$8 sps:$4 sm:$0xff]  }
 0x110   : > { %1932 = vmatprep.subr.bf16.mxu1 %v3486_v34  ;;  %v3506_v34 = vcombine.high %v1748_v29, %v1749_v30  ;;  %1345 = vmatpush1.bf16.msra.mxu0 %v3833_v33 }
 0x112   : > { %1028 = vmatmul.mubr.bf16.gmra.mrb[36].mxu1 %v4476_v13 }
 0x113   : > { %1037 = vmatprep.mubr.bf16.mxu1 %v4479_v18  ;;  %1933 = vmatpush1.bf16.msra.mxu1 %v3485_v39  ;;  %v3834_v39 = vld [vmem:[#allocation8 + $0x144] ss:$8 sps:$4 sm:$0xff]  }
 0x114   : > { %1934 = vmatprep.subr.bf16.mxu1 %v3488_v40  ;;  %v3505_v40 = vcombine.low %v1748_v29, %v1749_v30  ;;  %1346 = vmatprep.subr.bf16.mxu0 %v3834_v39  ;;  %v2435_v29 = vld [vmem:[#allocation5 + $0x138] sm:$0xff] }
 0x115   : > { %1347 = vmatpush1.bf16.msra.mxu0 %v3836_v41  ;;  %v3855_v30 = vld [vmem:[#allocation8 + $0x1b4] ss:$8 sps:$4 sm:$0xff]  }
 0x116   : > { %1348 = vmatprep.subr.bf16.mxu0 %v3837_v45 }
 0x117   : > { %1935 = vmatpush1.bf16.msra.mxu1 %v3487_v43  ;;  %v1752_v43 = vld [vmem:[#allocation5 + $0x390] sm:$0xff] }
 0x118   : > { %1936 = vmatprep.subr.bf16.mxu1 %v3490_v44  ;;  %v1753_v44 = vld [vmem:[#allocation5 + $0x3b0] sm:$0xff] }
 0x11a   : > { %1038 = vmatmul.mubr.bf16.gmra.mrb[40].mxu1 %v4484_v26 }
 0x11b   : > { %1047 = vmatprep.mubr.bf16.mxu1 %v4487_v28  ;;  %1937 = vmatpush1.bf16.msra.mxu1 %v3489_v48  ;;  %v3839_v48 = vld [vmem:[#allocation8 + $0x150] ss:$8 sps:$4 sm:$0xff]  }
 0x11c   : > { %1938 = vmatprep.subr.bf16.mxu1 %v3492_v50  ;;  %v3510_v50 = vcombine.high %v1752_v43, %v1753_v44  ;;  %1349 = vmatpush1.bf16.msra.mxu0 %v3839_v48 }
 0x11f   : > { %1939 = vmatpush1.bf16.msra.mxu1 %v3491_v53  ;;  %v3840_v53 = vld [vmem:[#allocation8 + $0x164] ss:$8 sps:$4 sm:$0xff]  }
 0x120   : > { %1940 = vmatprep.subr.bf16.mxu1 %v3494_v54  ;;  %v3509_v54 = vcombine.low %v1752_v43, %v1753_v44  ;;  %1350 = vmatprep.subr.bf16.mxu0 %v3840_v53  ;;  %v2439_v43 = vld [vmem:[#allocation5 + $0x1b8] sm:$0xff] }
 0x121   : > { %1351 = vmatpush1.bf16.msra.mxu0 %v3842_v55  ;;  %v3861_v44 = vld [vmem:[#allocation8 + $0x1d4] ss:$8 sps:$4 sm:$0xff]  }
 0x122   : > { %1048 = vmatmul.mubr.bf16.gmra.mrb[44].mxu1 %v4492_v35  ;;  %1352 = vmatprep.subr.bf16.mxu0 %v3843_v61 }
 0x123   : > { %1057 = vmatprep.mubr.bf16.mxu1 %v4495_v38  ;;  %1941 = vmatpush1.bf16.msra.mxu1 %v3493_v58  ;;  %v2426_v58 = vld [vmem:[#allocation5 + $0x18] sm:$0xff] }
 0x124   : > { %1942 = vmatprep.subr.bf16.mxu1 %v3496_v60  ;;  %v2427_v60 = vld [vmem:[#allocation5 + $0x38] sm:$0xff] }
 0x127   : > { %1943 = vmatpush1.bf16.msra.mxu1 %v3495_v63  ;;  %v3845_v63 = vld [vmem:[#allocation8 + $0x170] ss:$8 sps:$4 sm:$0xff]  }
 0x128   : > { %1944 = vmatprep.subr.bf16.mxu1 %v3498_v0  ;;  %v3546_v0 = vcombine.high %v2426_v58, %v2427_v60  ;;  %1353 = vmatpush1.bf16.msra.mxu0 %v3845_v63 }
 0x129   : > { %1354 = vmatprep.subr.bf16.mxu0 %v3846_v4 }
 0x12a   : > { %1058 = vmatmul.mubr.bf16.gmra.mrb[48].mxu1 %v4500_v47 }
 0x12b   : > { %1067 = vmatprep.mubr.bf16.mxu1 %v4503_v49  ;;  %1945 = vmatpush1.bf16.msra.mxu1 %v3497_v7  ;;  %v3545_v7 = vcombine.low %v2426_v58, %v2427_v60  ;;  %v2443_v58 = vld [vmem:[#allocation5 + $0x238] sm:$0xff] }
 0x12c   : > { %1946 = vmatprep.subr.bf16.mxu1 %v3500_v10  ;;  %v3548_v10 = vcombine.high %v2428_v1, %v2429_v2  ;;  %1355 = vmatpush1.bf16.msra.mxu0 %v3848_v9  ;;  %v3867_v60 = vld [vmem:[#allocation8 + $0x1f4] ss:$8 sps:$4 sm:$0xff]   ;;  %v3872_v2 = vld [vmem:[#allocation8 + $0x4] ss:$8 sps:$4 sm:$0xff]  }
 0x12d   : > { %v2445_v1 = vld [vmem:[#allocation5 + $0x278] sm:$0xff] }
 0x12e   : > { %v2446_v9 = vld [vmem:[#allocation5 + $0x298] sm:$0xff] }
 0x12f   : > { %1947 = vmatpush1.bf16.msra.mxu1 %v3499_v15  ;;  %v3851_v15 = vld [vmem:[#allocation8 + $0x190] ss:$8 sps:$4 sm:$0xff]  }
 0x130   : > { %1948 = vmatprep.subr.bf16.mxu1 %v3502_v20  ;;  %v2432_v20 = vld [vmem:[#allocation5 + $0xd8] sm:$0xff] }
 0x131   : > { %v3552_v25 = vcombine.high %v2432_v20, %v2433_v21  ;;  %v3551_v31 = vcombine.low %v2432_v20, %v2433_v21  ;;  %v2450_v20 = vld [vmem:[#allocation5 + $0x318] sm:$0xff] }
 0x132   : > { %1068 = vmatmul.mubr.bf16.gmra.mrb[52].mxu1 %v4508_v57  ;;  %v2451_v21 = vld [vmem:[#allocation5 + $0x338] sm:$0xff] }
 0x133   : > { %1077 = vmatprep.mubr.bf16.mxu1 %v4511_v59  ;;  %1949 = vmatpush1.bf16.msra.mxu1 %v3501_v24  ;;  %v3854_v24 = vld [vmem:[#allocation8 + $0x1a0] ss:$8 sps:$4 sm:$0xff]  }
 0x134   : > { %1950 = vmatprep.subr.bf16.mxu1 %v3504_v27  ;;  %v2434_v27 = vld [vmem:[#allocation5 + $0x118] sm:$0xff] }
 0x135   : > { %v3554_v33 = vcombine.high %v2434_v27, %v2435_v29  ;;  %v3553_v39 = vcombine.low %v2434_v27, %v2435_v29  ;;  %v3569_v27 = vcombine.low %v2450_v20, %v2451_v21 }
 0x137   : > { %1951 = vmatpush1.bf16.msra.mxu1 %v3503_v32  ;;  %v3857_v32 = vld [vmem:[#allocation8 + $0x1b0] ss:$8 sps:$4 sm:$0xff]  }
 0x138   : > { %1952 = vmatprep.subr.bf16.mxu1 %v3506_v34  ;;  %v2436_v34 = vld [vmem:[#allocation5 + $0x158] sm:$0xff] }
 0x139   : > { %v3556_v41 = vcombine.high %v2436_v34, %v2437_v36  ;;  %v3555_v45 = vcombine.low %v2436_v34, %v2437_v36  ;;  %v2456_v34 = vld [vmem:[#allocation5 + $0x3d8] sm:$0xff] }
 0x13a   : > { %1078 = vmatmul.mubr.bf16.gmra.mrb[56].mxu1 %v4516_v3  ;;  %v2457_v36 = vld [vmem:[#allocation5 + $0x3f8] sm:$0xff] }
 0x13b   : > { %1087 = vmatprep.mubr.bf16.mxu1 %v4519_v5  ;;  %1953 = vmatpush1.bf16.msra.mxu1 %v3505_v40  ;;  %v3860_v40 = vld [vmem:[#allocation8 + $0x1c0] ss:$8 sps:$4 sm:$0xff]  }
 0x13c   : > { %1954 = vmatprep.subr.bf16.mxu1 %v3508_v42  ;;  %v2438_v42 = vld [vmem:[#allocation5 + $0x198] sm:$0xff] }
 0x13d   : > { %v3558_v48 = vcombine.high %v2438_v42, %v2439_v43  ;;  %v3557_v53 = vcombine.low %v2438_v42, %v2439_v43  ;;  %v338_v42 = vlaneseq }
 0x13f   : > { %1955 = vmatpush1.bf16.msra.mxu1 %v3507_v46  ;;  %v3863_v46 = vld [vmem:[#allocation8 + $0x1d0] ss:$8 sps:$4 sm:$0xff]   ;;  %v339_v43 = vshrl.u32 %v338_v42, 7 }
 0x140   : > { %1956 = vmatprep.subr.bf16.mxu1 %v3510_v50  ;;  %v2440_v50 = vld [vmem:[#allocation5 + $0x1d8] sm:$0xff] }
 0x141   : > { %v3560_v55 = vcombine.high %v2440_v50, %v2441_v51  ;;  %v3559_v61 = vcombine.low %v2440_v50, %v2441_v51 }
 0x142   : > { %1088 = vmatmul.mubr.bf16.gmra.mrb[60].mxu1 %v4524_v16 }
 0x143   : > { %1957 = vmatpush1.bf16.msra.mxu1 %v3509_v54  ;;  %1960 = vmatprep.mubr.bf16.mxu1 %v4464_v17  ;;  %v3849_v17 = vld [vmem:[#allocation8 + $0x194] ss:$8 sps:$4 sm:$0xff]   ;;  %v3866_v54 = vld [vmem:[#allocation8 + $0x1e0] ss:$8 sps:$4 sm:$0xff]  }
 0x144   : > { %1958 = vmatprep.subr.bf16.mxu1 %v3512_v56  ;;  %1356 = vmatprep.subr.bf16.mxu0 %v3849_v17  ;;  %v2442_v56 = vld [vmem:[#allocation5 + $0x218] sm:$0xff] }
 0x145   : > { %1357 = vmatpush1.bf16.msra.mxu0 %v3851_v15  ;;  %v3562_v63 = vcombine.high %v2442_v56, %v2443_v58  ;;  %v3561_v4 = vcombine.low %v2442_v56, %v2443_v58  ;;  %v2448_v17 = vld [vmem:[#allocation5 + $0x2d8] sm:$0xff] }
 0x146   : > { %1358 = vmatprep.subr.bf16.mxu0 %v3852_v22 }
 0x147   : > { %1959 = vmatpush1.bf16.msra.mxu1 %v3511_v62  ;;  %v3869_v62 = vld [vmem:[#allocation8 + $0x1f0] ss:$8 sps:$4 sm:$0xff]  }
 0x148   : > { %2630 = vmatprep.subr.bf16.mxu1 %v3546_v0  ;;  %v2444_v0 = vld [vmem:[#allocation5 + $0x258] sm:$0xff] }
 0x149   : > { %1359 = vmatpush1.bf16.msra.mxu0 %v3854_v24  ;;  %v3563_v11 = vcombine.low %v2444_v0, %v2445_v1  ;;  %v2452_v24 = vld [vmem:[#allocation5 + $0x358] sm:$0xff] }
 0x14a   : > { %1961 = vmatmul.mubr.bf16.vlgmr.msra.gmra.mrb[64].mxu1 %v4468_v6  ;;  %1360 = vmatprep.subr.bf16.mxu0 %v3855_v30  ;;  %v2454_v30 = vld [vmem:[#allocation5 + $0x398] sm:$0xff] }
 0x14b   : > { %2631 = vmatpush1.bf16.msra.mxu1 %v3545_v7  ;;  %1970 = vmatprep.mubr.bf16.mxu1 %v4471_v8  ;;  %v3564_v7 = vcombine.high %v2444_v0, %v2445_v1 }
 0x14c   : > { %2632 = vmatprep.subr.bf16.mxu1 %v3548_v10  ;;  %v2447_v10 = vld [vmem:[#allocation5 + $0x2b8] sm:$0xff] }
 0x14d   : > { %1361 = vmatpush1.bf16.msra.mxu0 %v3857_v32  ;;  %v3566_v12 = vcombine.high %v2446_v9, %v2447_v10  ;;  %v3565_v15 = vcombine.low %v2446_v9, %v2447_v10 }
 0x14e   : > { %1362 = vmatprep.subr.bf16.mxu0 %v3858_v37 }
 0x14f   : > { %2633 = vmatpush1.bf16.msra.mxu1 %v3547_v14  ;;  %v2449_v14 = vld [vmem:[#allocation5 + $0x2f8] sm:$0xff] }
 0x150   : > { %2634 = vmatprep.subr.bf16.mxu1 %v3550_v19  ;;  %v3568_v19 = vcombine.high %v2448_v17, %v2449_v14  ;;  %v3567_v22 = vcombine.low %v2448_v17, %v2449_v14 }
 0x151   : > { %1363 = vmatpush1.bf16.msra.mxu0 %v3860_v40  ;;  %v3575_v40 = vcombine.low %v2456_v34, %v2457_v36 }
 0x152   : > { %1971 = vmatmul.mubr.bf16.gmra.mrb[68].mxu1 %v4476_v13  ;;  %1364 = vmatprep.subr.bf16.mxu0 %v3861_v44  ;;  %v4564_v44 = vsub.s32 0, %v339_v43 }
 0x153   : > { %2635 = vmatpush1.bf16.msra.mxu1 %v3549_v23  ;;  %1980 = vmatprep.mubr.bf16.mxu1 %v4479_v18  ;;  %v3570_v23 = vcombine.high %v2450_v20, %v2451_v21 }
 0x154   : > { %2636 = vmatprep.subr.bf16.mxu1 %v3552_v25  ;;  %v2453_v25 = vld [vmem:[#allocation5 + $0x378] sm:$0xff] }
 0x155   : > { %1365 = vmatpush1.bf16.msra.mxu0 %v3863_v46  ;;  %v3572_v29 = vcombine.high %v2452_v24, %v2453_v25  ;;  %v3571_v32 = vcombine.low %v2452_v24, %v2453_v25  ;;  %v4566_v46 = vsub.s32 1, %v339_v43 }
 0x156   : > { %1366 = vmatprep.subr.bf16.mxu0 %v3864_v52 }
 0x157   : > { %2637 = vmatpush1.bf16.msra.mxu1 %v3551_v31  ;;  %v2455_v31 = vld [vmem:[#allocation5 + $0x3b8] sm:$0xff] }
 0x158   : > { %2638 = vmatprep.subr.bf16.mxu1 %v3554_v33  ;;  %v3574_v33 = vcombine.high %v2454_v30, %v2455_v31  ;;  %v3573_v37 = vcombine.low %v2454_v30, %v2455_v31 }
 0x159   : > { %1367 = vmatpush1.bf16.msra.mxu0 %v3866_v54 }
 0x15a   : > { %1981 = vmatmul.mubr.bf16.gmra.mrb[72].mxu1 %v4484_v26  ;;  %1368 = vmatprep.subr.bf16.mxu0 %v3867_v60 }
 0x15b   : > { %2639 = vmatpush1.bf16.msra.mxu1 %v3553_v39  ;;  %1990 = vmatprep.mubr.bf16.mxu1 %v4487_v28  ;;  %v3576_v39 = vcombine.high %v2456_v34, %v2457_v36 }
 0x15c   : > { %2640 = vmatprep.subr.bf16.mxu1 %v3556_v41  ;;  %v4014_v41 = vld [vmem:[%s4449_s10 + $0x4] ss:$8 sps:$4 sm:$0xff]  }
 0x15d   : > { %1369 = vmatpush1.bf16.msra.mxu0 %v3869_v62 }
 0x15e   : > { %1611 = vmatprep.subr.bf16.mxu0 %v3872_v2 }
 0x15f   : > { %2641 = vmatpush1.bf16.msra.mxu1 %v3555_v45  ;;  %v336_v45 = vld [vmem:[#allocation7] sm:$0x3] }
 0x160   : > { %2642 = vmatprep.subr.bf16.mxu1 %v3558_v48  ;;  %v4569_v48 = vrot.slane %v336_v45, %v4564_v44 }
 0x162   : > { %1991 = vmatmul.mubr.bf16.gmra.mrb[76].mxu1 %v4492_v35 }
 0x163   : > { %2643 = vmatpush1.bf16.msra.mxu1 %v3557_v53  ;;  %2000 = vmatprep.mubr.bf16.mxu1 %v4495_v38 }
 0x164   : > { %2644 = vmatprep.subr.bf16.mxu1 %v3560_v55 }
 0x167   : > { %2645 = vmatpush1.bf16.msra.mxu1 %v3559_v61 }
 0x168   : > { %2646 = vmatprep.subr.bf16.mxu1 %v3562_v63 }
 0x16a   : > { %2001 = vmatmul.mubr.bf16.gmra.mrb[80].mxu1 %v4500_v47 }
 0x16b   : > { %2647 = vmatpush1.bf16.msra.mxu1 %v3561_v4  ;;  %2010 = vmatprep.mubr.bf16.mxu1 %v4503_v49 }
 0x16c   : > { %2648 = vmatprep.subr.bf16.mxu1 %v3564_v7 }
 0x16f   : > { %2649 = vmatpush1.bf16.msra.mxu1 %v3563_v11 }
 0x170   : > { %2650 = vmatprep.subr.bf16.mxu1 %v3566_v12 }
 0x172   : > { %2011 = vmatmul.mubr.bf16.gmra.mrb[84].mxu1 %v4508_v57 }
 0x173   : > { %2651 = vmatpush1.bf16.msra.mxu1 %v3565_v15  ;;  %2020 = vmatprep.mubr.bf16.mxu1 %v4511_v59 }
 0x174   : > { %2652 = vmatprep.subr.bf16.mxu1 %v3568_v19 }
 0x177   : > { %2653 = vmatpush1.bf16.msra.mxu1 %v3567_v22 }
 0x178   : > { %2654 = vmatprep.subr.bf16.mxu1 %v3570_v23 }
 0x17a   : > { %2021 = vmatmul.mubr.bf16.gmra.mrb[88].mxu1 %v4516_v3 }
 0x17b   : > { %2655 = vmatpush1.bf16.msra.mxu1 %v3569_v27  ;;  %2030 = vmatprep.mubr.bf16.mxu1 %v4519_v5 }
 0x17c   : > { %2656 = vmatprep.subr.bf16.mxu1 %v3572_v29 }
 0x17f   : > { %2657 = vmatpush1.bf16.msra.mxu1 %v3571_v32 }
 0x180   : > { %2658 = vmatprep.subr.bf16.mxu1 %v3574_v33 }
 0x182   : > { %2031 = vmatmul.mubr.bf16.gmra.mrb[92].mxu1 %v4524_v16 }
 0x183   : > { %2659 = vmatpush1.bf16.msra.mxu1 %v3573_v37  ;;  %2662 = vmatprep.mubr.bf16.mxu1 %v4014_v41 }
 0x184   : > { %2660 = vmatprep.subr.bf16.mxu1 %v3576_v39 }
 0x187   : > { %2661 = vmatpush1.bf16.msra.mxu1 %v3575_v40 }
 0x18a   : > { %2663 = vmatmul.mubr.bf16.vlgmr.msra.gmra.mrb[96].mxu1 %v4468_v6  ;;  %v4573_v6 = vrot.slane %v336_v45, %v4566_v46 }
 0x18b   : > { %2672 = vmatprep.mubr.bf16.mxu1 %v4471_v8 }
 0x192   : > { %2673 = vmatmul.mubr.bf16.gmra.mrb[100].mxu1 %v4476_v13 }
 0x193   : > { %2682 = vmatprep.mubr.bf16.mxu1 %v4479_v18 }
 0x19a   : > { %2683 = vmatmul.mubr.bf16.gmra.mrb[104].mxu1 %v4484_v26 }
 0x19b   : > { %2692 = vmatprep.mubr.bf16.mxu1 %v4487_v28 }
 0x19d   : > { %v622_v8 = vpop.f32.mrb[0].mxu1 }
 0x19e   : > { %v623_v13 = vadd.f32 %v622_v8, %v4569_v48  ;;  %v624_v50 = vpop.f32.mrb[1].mxu1 }
 0x19f   : > { %v625_v18 = vadd.f32 %v624_v50, %v4573_v6  ;;  %v626_v51 = vpop.f32.mrb[2].mxu1 }
 0x1a0   : > { %v627_v52 = vadd.f32 %v626_v51, %v4569_v48  ;;  %v628_v53 = vpop.f32.mrb[3].mxu1  ;;  %v701_v55 = vmax.f32 %v623_v13, 0.0 }
 0x1a1   : > { %v629_v54 = vadd.f32 %v628_v53, %v4573_v6  ;;  %v702_v26 = vmax.f32 %v625_v18, 0.0 }
 0x1a2   : > { %v703_v56 = vmax.f32 %v627_v52, 0.0  ;;  %2693 = vmatmul.mubr.bf16.gmra.mrb[108].mxu1 %v4492_v35 }
 0x1a3   : > { %v704_v58 = vmax.f32 %v629_v54, 0.0  ;;  %2702 = vmatprep.mubr.bf16.mxu1 %v4495_v38 }
 0x1a4   : > { %v4582_v28 = vpack.c.bf16 %v703_v56, %v701_v55 }
 0x1a5   : > { %v4584_v60 = vpack.c.bf16 %v704_v58, %v702_v26  ;;  %v632_v61 = vpop.f32.mrb[4].mxu1 }
 0x1a6   : > { %v633_v62 = vadd.f32 %v632_v61, %v4569_v48  ;;  %v634_v63 = vpop.f32.mrb[5].mxu1 }
 0x1a7   : > { %v635_v0 = vadd.f32 %v634_v63, %v4573_v6  ;;  %v636_v1 = vpop.f32.mrb[6].mxu1 }
 0x1a8   : > { %v637_v2 = vadd.f32 %v636_v1, %v4569_v48  ;;  %v638_v4 = vpop.f32.mrb[7].mxu1  ;;  %v705_v7 = vmax.f32 %v633_v62, 0.0 }
 0x1a9   : > { %v639_v35 = vadd.f32 %v638_v4, %v4573_v6  ;;  %v706_v38 = vmax.f32 %v635_v0, 0.0 }
 0x1aa   : > { %v707_v9 = vmax.f32 %v637_v2, 0.0  ;;  %2703 = vmatmul.mubr.bf16.gmra.mrb[112].mxu1 %v4500_v47 }
 0x1ab   : > { %v708_v10 = vmax.f32 %v639_v35, 0.0  ;;  %2712 = vmatprep.mubr.bf16.mxu1 %v4503_v49 }
 0x1ac   : > { %v4592_v11 = vpack.c.bf16 %v707_v9, %v705_v7 }
 0x1ad   : > { %v4594_v12 = vpack.c.bf16 %v708_v10, %v706_v38  ;;  %v642_v17 = vpop.f32.mrb[8].mxu1 }
 0x1ae   : > { %v643_v14 = vadd.f32 %v642_v17, %v4569_v48  ;;  %v644_v15 = vpop.f32.mrb[9].mxu1 }
 0x1af   : > { %v645_v19 = vadd.f32 %v644_v15, %v4573_v6  ;;  %v646_v20 = vpop.f32.mrb[10].mxu1 }
 0x1b0   : > { %v647_v21 = vadd.f32 %v646_v20, %v4569_v48  ;;  %v648_v22 = vpop.f32.mrb[11].mxu1  ;;  %v709_v23 = vmax.f32 %v643_v14, 0.0 }
 0x1b1   : > { %v649_v47 = vadd.f32 %v648_v22, %v4573_v6  ;;  %v710_v49 = vmax.f32 %v645_v19, 0.0 }
 0x1b2   : > { %v711_v24 = vmax.f32 %v647_v21, 0.0  ;;  %2713 = vmatmul.mubr.bf16.gmra.mrb[116].mxu1 %v4508_v57 }
 0x1b3   : > { %v712_v25 = vmax.f32 %v649_v47, 0.0  ;;  %2722 = vmatprep.mubr.bf16.mxu1 %v4511_v59 }
 0x1b4   : > { %v4602_v27 = vpack.c.bf16 %v711_v24, %v709_v23 }
 0x1b5   : > { %v4604_v29 = vpack.c.bf16 %v712_v25, %v710_v49  ;;  %v652_v30 = vpop.f32.mrb[12].mxu1 }
 0x1b6   : > { %v653_v31 = vadd.f32 %v652_v30, %v4569_v48  ;;  %v654_v32 = vpop.f32.mrb[13].mxu1 }
 0x1b7   : > { %v655_v33 = vadd.f32 %v654_v32, %v4573_v6  ;;  %v656_v34 = vpop.f32.mrb[14].mxu1 }
 0x1b8   : > { %v657_v36 = vadd.f32 %v656_v34, %v4569_v48  ;;  %v658_v37 = vpop.f32.mrb[15].mxu1  ;;  %v713_v39 = vmax.f32 %v653_v31, 0.0 }
 0x1b9   : > { %v659_v57 = vadd.f32 %v658_v37, %v4573_v6  ;;  %v714_v59 = vmax.f32 %v655_v33, 0.0 }
 0x1ba   : > { %v715_v40 = vmax.f32 %v657_v36, 0.0  ;;  %2723 = vmatmul.mubr.bf16.gmra.mrb[120].mxu1 %v4516_v3 }
 0x1bb   : > { %v716_v41 = vmax.f32 %v659_v57, 0.0  ;;  %2732 = vmatprep.mubr.bf16.mxu1 %v4519_v5  ;;  %v813_v57 = vld [vmem:[#allocation7 + $0x2] sm:$0x3] }
 0x1bc   : > { %v4612_v42 = vpack.c.bf16 %v715_v40, %v713_v39 }
 0x1bd   : > { %v4614_v43 = vpack.c.bf16 %v716_v41, %v714_v59  ;;  %v662_v45 = vpop.f32.mrb[16].mxu1 }
 0x1be   : > { %v663_v8 = vadd.f32 %v662_v45, %v4569_v48  ;;  %v664_v13 = vpop.f32.mrb[17].mxu1 }
 0x1bf   : > { %v665_v50 = vadd.f32 %v664_v13, %v4573_v6  ;;  %v666_v18 = vpop.f32.mrb[18].mxu1 }
 0x1c0   : > { %v667_v51 = vadd.f32 %v666_v18, %v4569_v48  ;;  %v668_v52 = vpop.f32.mrb[19].mxu1  ;;  %v717_v53 = vmax.f32 %v663_v8, 0.0  ;;  %v4646_v8 = vrot.slane %v813_v57, %v4564_v44  ;;  %v4649_v18 = vrot.slane %v813_v57, %v4566_v46  ;;  %v3881_v57 = vld [vmem:[#allocation8 + $0x34] ss:$8 sps:$4 sm:$0xff]  }
 0x1c1   : > { %v669_v3 = vadd.f32 %v668_v52, %v4573_v6  ;;  %v718_v5 = vmax.f32 %v665_v50, 0.0 }
 0x1c2   : > { %v719_v54 = vmax.f32 %v667_v51, 0.0  ;;  %2733 = vmatmul.mubr.bf16.gmra.mrb[124].mxu1 %v4524_v16 }
 0x1c3   : > { %v720_v55 = vmax.f32 %v669_v3, 0.0 }
 0x1c4   : > { %v4621_v56 = vpack.c.bf16 %v719_v54, %v717_v53 }
 0x1c5   : > { %v4623_v26 = vpack.c.bf16 %v720_v55, %v718_v5  ;;  %v672_v58 = vpop.f32.mrb[20].mxu1 }
 0x1c6   : > { %v673_v61 = vadd.f32 %v672_v58, %v4569_v48  ;;  %v674_v62 = vpop.f32.mrb[21].mxu1 }
 0x1c7   : > { %v675_v63 = vadd.f32 %v674_v62, %v4573_v6  ;;  %v676_v0 = vpop.f32.mrb[22].mxu1 }
 0x1c8   : > { %v677_v1 = vadd.f32 %v676_v0, %v4569_v48  ;;  %v678_v2 = vpop.f32.mrb[23].mxu1  ;;  %v721_v35 = vmax.f32 %v673_v61, 0.0 }
 0x1c9   : > { %v679_v4 = vadd.f32 %v678_v2, %v4573_v6  ;;  %v722_v7 = vmax.f32 %v675_v63, 0.0 }
 0x1ca   : > { %v723_v16 = vmax.f32 %v677_v1, 0.0 }
 0x1cb   : > { %v724_v9 = vmax.f32 %v679_v4, 0.0 }
 0x1cc   : > { %v4629_v38 = vpack.c.bf16 %v723_v16, %v721_v35  ;;  %v3870_v35 = vld [vmem:[#allocation8] ss:$8 sps:$4 sm:$0xff]  }
 0x1cd   : > { %v4631_v10 = vpack.c.bf16 %v724_v9, %v722_v7  ;;  %v682_v17 = vpop.f32.mrb[24].mxu1  ;;  %v3875_v9 = vld [vmem:[#allocation8 + $0x14] ss:$8 sps:$4 sm:$0xff]  }
 0x1ce   : > { %v683_v14 = vadd.f32 %v682_v17, %v4569_v48  ;;  %v684_v15 = vpop.f32.mrb[25].mxu1 }
 0x1cf   : > { %v685_v19 = vadd.f32 %v684_v15, %v4573_v6  ;;  %v686_v20 = vpop.f32.mrb[26].mxu1 }
 0x1d0   : > { %v687_v21 = vadd.f32 %v686_v20, %v4569_v48  ;;  %v688_v22 = vpop.f32.mrb[27].mxu1  ;;  %v725_v23 = vmax.f32 %v683_v14, 0.0 }
 0x1d1   : > { %v689_v47 = vadd.f32 %v688_v22, %v4573_v6  ;;  %v726_v49 = vmax.f32 %v685_v19, 0.0 }
 0x1d2   : > { %v727_v24 = vmax.f32 %v687_v21, 0.0  ;;  %v3873_v21 = vld [vmem:[#allocation8 + $0x10] ss:$8 sps:$4 sm:$0xff]  }
 0x1d3   : > { %v728_v25 = vmax.f32 %v689_v47, 0.0 }
 0x1d4   : > { %v4637_v30 = vpack.c.bf16 %v727_v24, %v725_v23  ;;  %v3878_v23 = vld [vmem:[#allocation8 + $0x24] ss:$8 sps:$4 sm:$0xff]  }
 0x1d5   : > { %v4639_v31 = vpack.c.bf16 %v728_v25, %v726_v49  ;;  %v692_v32 = vpop.f32.mrb[28].mxu1 }
 0x1d6   : > { %v693_v33 = vadd.f32 %v692_v32, %v4569_v48  ;;  %v694_v34 = vpop.f32.mrb[29].mxu1 }
 0x1d7   : > { %v695_v36 = vadd.f32 %v694_v34, %v4573_v6  ;;  %v696_v37 = vpop.f32.mrb[30].mxu1  ;;  %v3876_v34 = vld [vmem:[#allocation8 + $0x20] ss:$8 sps:$4 sm:$0xff]  }
 0x1d8   : > { %v697_v39 = vadd.f32 %v696_v37, %v4569_v48  ;;  %v698_v40 = vpop.f32.mrb[31].mxu1  ;;  %v729_v41 = vmax.f32 %v693_v33, 0.0 }
 0x1d9   : > { %v699_v59 = vadd.f32 %v698_v40, %v4573_v6  ;;  %v730_v13 = vmax.f32 %v695_v36, 0.0 }
 0x1da   : > { %v731_v45 = vmax.f32 %v697_v39, 0.0 }
 0x1db   : > { %v732_v50 = vmax.f32 %v699_v59, 0.0 }
 0x1dc   : > { %v4651_v51 = vpack.c.bf16 %v731_v45, %v729_v41 }
 0x1dd   : > { %v4653_v52 = vpack.c.bf16 %v732_v50, %v730_v13  ;;  %v1019_v3 = vpop.f32.mrb[32].mxu1  ;;  %v3879_v13 = vld [vmem:[#allocation8 + $0x30] ss:$8 sps:$4 sm:$0xff]  }
 0x1de   : > { %v1020_v48 = vadd.f32 %v1019_v3, %v4646_v8  ;;  %v1021_v53 = vpop.f32.mrb[33].mxu1 }
 0x1df   : > { %v1022_v6 = vadd.f32 %v1021_v53, %v4649_v18  ;;  %v1023_v54 = vpop.f32.mrb[34].mxu1 }
 0x1e0   : > { %v1024_v5 = vadd.f32 %v1023_v54, %v4646_v8  ;;  %v1025_v55 = vpop.f32.mrb[35].mxu1  ;;  %v1098_v61 = vmax.f32 %v1020_v48, 0.0  ;;  %v3884_v48 = vld [vmem:[#allocation8 + $0x44] ss:$8 sps:$4 sm:$0xff]  }
 0x1e1   : > { %v1026_v58 = vadd.f32 %v1025_v55, %v4649_v18  ;;  %v1099_v63 = vmax.f32 %v1022_v6, 0.0 }
 0x1e2   : > { %v1100_v62 = vmax.f32 %v1024_v5, 0.0 }
 0x1e3   : > { %v1101_v0 = vmax.f32 %v1026_v58, 0.0  ;;  %v3882_v58 = vld [vmem:[#allocation8 + $0x40] ss:$8 sps:$4 sm:$0xff]  }
 0x1e4   : > { %v1130_v1 = vpack.c.bf16 %v1100_v62, %v1098_v61 }
 0x1e5   : > { %v1029_v2 = vpop.f32.mrb[36].mxu1  ;;  %v1131_v4 = vpack.c.bf16 %v1101_v0, %v1099_v63  ;;  %v3887_v63 = vld [vmem:[#allocation8 + $0x54] ss:$8 sps:$4 sm:$0xff]  }
 0x1e6   : > { %v1030_v16 = vadd.f32 %v1029_v2, %v4646_v8  ;;  %v1031_v7 = vpop.f32.mrb[37].mxu1 }
 0x1e7   : > { %v1032_v17 = vadd.f32 %v1031_v7, %v4649_v18  ;;  %v1033_v14 = vpop.f32.mrb[38].mxu1  ;;  %1370 = vmatprep.mubr.bf16.mxu0 %v1131_v4 }
 0x1e8   : > { %v1034_v15 = vadd.f32 %v1033_v14, %v4646_v8  ;;  %v1035_v19 = vpop.f32.mrb[39].mxu1  ;;  %1371 = vmatmul.mubr.bf16.vlgmr.msra.gmra.mrb[0].mxu0 %v1130_v1  ;;  %v1102_v22 = vmax.f32 %v1030_v16, 0.0  ;;  %v3885_v16 = vld [vmem:[#allocation8 + $0x50] ss:$8 sps:$4 sm:$0xff]  }
 0x1e9   : > { %v1036_v20 = vadd.f32 %v1035_v19, %v4649_v18  ;;  %1612 = vmatpush1.bf16.msra.mxu0 %v3870_v35  ;;  %v1103_v24 = vmax.f32 %v1032_v17, 0.0  ;;  %v3890_v17 = vld [vmem:[#allocation8 + $0x64] ss:$8 sps:$4 sm:$0xff]  }
 0x1ea   : > { %v1104_v47 = vmax.f32 %v1034_v15, 0.0  ;;  %1613 = vmatprep.subr.bf16.mxu0 %v3875_v9 }
 0x1eb   : > { %v1105_v49 = vmax.f32 %v1036_v20, 0.0 }
 0x1ec   : > { %v1132_v25 = vpack.c.bf16 %v1104_v47, %v1102_v22  ;;  %v3888_v22 = vld [vmem:[#allocation8 + $0x60] ss:$8 sps:$4 sm:$0xff]  }
 0x1ed   : > { %v1133_v32 = vpack.c.bf16 %v1105_v49, %v1103_v24  ;;  %v1039_v33 = vpop.f32.mrb[40].mxu1  ;;  %1614 = vmatpush1.bf16.msra.mxu0 %v3873_v21  ;;  %v3893_v24 = vld [vmem:[#allocation8 + $0x74] ss:$8 sps:$4 sm:$0xff]  }
 0x1ee   : > { %v1040_v36 = vadd.f32 %v1039_v33, %v4646_v8  ;;  %v1041_v37 = vpop.f32.mrb[41].mxu1  ;;  %1615 = vmatprep.subr.bf16.mxu0 %v3878_v23 }
 0x1ef   : > { %v1042_v39 = vadd.f32 %v1041_v37, %v4649_v18  ;;  %v1043_v40 = vpop.f32.mrb[42].mxu1  ;;  %1380 = vmatprep.mubr.bf16.mxu0 %v1133_v32 }
 0x1f0   : > { %v1044_v59 = vadd.f32 %v1043_v40, %v4646_v8  ;;  %v1045_v41 = vpop.f32.mrb[43].mxu1  ;;  %1381 = vmatmul.mubr.bf16.gmra.mrb[4].mxu0 %v1132_v25  ;;  %v1106_v50 = vmax.f32 %v1040_v36, 0.0  ;;  %v3891_v36 = vld [vmem:[#allocation8 + $0x70] ss:$8 sps:$4 sm:$0xff]  }
 0x1f1   : > { %v1046_v45 = vadd.f32 %v1045_v41, %v4649_v18  ;;  %1616 = vmatpush1.bf16.msra.mxu0 %v3876_v34  ;;  %v1107_v53 = vmax.f32 %v1042_v39, 0.0  ;;  %v3896_v39 = vld [vmem:[#allocation8 + $0x84] ss:$8 sps:$4 sm:$0xff]  }
 0x1f2   : > { %v1108_v3 = vmax.f32 %v1044_v59, 0.0  ;;  %1617 = vmatprep.subr.bf16.mxu0 %v3881_v57 }
 0x1f3   : > { %v1109_v6 = vmax.f32 %v1046_v45, 0.0 }
 0x1f4   : > { %v1134_v54 = vpack.c.bf16 %v1108_v3, %v1106_v50  ;;  %v3894_v50 = vld [vmem:[#allocation8 + $0x80] ss:$8 sps:$4 sm:$0xff]  }
 0x1f5   : > { %v1135_v5 = vpack.c.bf16 %v1109_v6, %v1107_v53  ;;  %v1049_v55 = vpop.f32.mrb[44].mxu1  ;;  %1618 = vmatpush1.bf16.msra.mxu0 %v3879_v13  ;;  %v3899_v53 = vld [vmem:[#allocation8 + $0x94] ss:$8 sps:$4 sm:$0xff]  }
 0x1f6   : > { %v1050_v61 = vadd.f32 %v1049_v55, %v4646_v8  ;;  %v1051_v62 = vpop.f32.mrb[45].mxu1  ;;  %1619 = vmatprep.subr.bf16.mxu0 %v3884_v48 }
 0x1f7   : > { %v1052_v0 = vadd.f32 %v1051_v62, %v4649_v18  ;;  %v1053_v1 = vpop.f32.mrb[46].mxu1  ;;  %1390 = vmatprep.mubr.bf16.mxu0 %v1135_v5 }
 0x1f8   : > { %v1054_v2 = vadd.f32 %v1053_v1, %v4646_v8  ;;  %v1055_v4 = vpop.f32.mrb[47].mxu1  ;;  %1391 = vmatmul.mubr.bf16.gmra.mrb[8].mxu0 %v1134_v54  ;;  %v1110_v7 = vmax.f32 %v1050_v61, 0.0  ;;  %v3897_v61 = vld [vmem:[#allocation8 + $0x90] ss:$8 sps:$4 sm:$0xff]  }
 0x1f9   : > { %v1056_v35 = vadd.f32 %v1055_v4, %v4649_v18  ;;  %1620 = vmatpush1.bf16.msra.mxu0 %v3882_v58  ;;  %v1111_v14 = vmax.f32 %v1052_v0, 0.0  ;;  %v3902_v0 = vld [vmem:[#allocation8 + $0xa4] ss:$8 sps:$4 sm:$0xff]  }
 0x1fa   : > { %v1112_v9 = vmax.f32 %v1054_v2, 0.0  ;;  %1621 = vmatprep.subr.bf16.mxu0 %v3887_v63 }
 0x1fb   : > { %v1113_v15 = vmax.f32 %v1056_v35, 0.0 }
 0x1fc   : > { %v1136_v19 = vpack.c.bf16 %v1112_v9, %v1110_v7  ;;  %v3900_v7 = vld [vmem:[#allocation8 + $0xa0] ss:$8 sps:$4 sm:$0xff]  }
 0x1fd   : > { %v1137_v20 = vpack.c.bf16 %v1113_v15, %v1111_v14  ;;  %v1059_v21 = vpop.f32.mrb[48].mxu1  ;;  %1622 = vmatpush1.bf16.msra.mxu0 %v3885_v16  ;;  %v3905_v14 = vld [vmem:[#allocation8 + $0xb4] ss:$8 sps:$4 sm:$0xff]  }
 0x1fe   : > { %v1060_v47 = vadd.f32 %v1059_v21, %v4646_v8  ;;  %v1061_v23 = vpop.f32.mrb[49].mxu1  ;;  %1623 = vmatprep.subr.bf16.mxu0 %v3890_v17 }
 0x1ff   : > { %v1062_v49 = vadd.f32 %v1061_v23, %v4649_v18  ;;  %v1063_v25 = vpop.f32.mrb[50].mxu1  ;;  %1400 = vmatprep.mubr.bf16.mxu0 %v1137_v20 }
 0x200   : > { %v1064_v32 = vadd.f32 %v1063_v25, %v4646_v8  ;;  %v1065_v33 = vpop.f32.mrb[51].mxu1  ;;  %1401 = vmatmul.mubr.bf16.gmra.mrb[12].mxu0 %v1136_v19  ;;  %v1114_v37 = vmax.f32 %v1060_v47, 0.0  ;;  %v3903_v47 = vld [vmem:[#allocation8 + $0xb0] ss:$8 sps:$4 sm:$0xff]  }
 0x201   : > { %v1066_v34 = vadd.f32 %v1065_v33, %v4649_v18  ;;  %1624 = vmatpush1.bf16.msra.mxu0 %v3888_v22  ;;  %v1115_v40 = vmax.f32 %v1062_v49, 0.0  ;;  %v3908_v49 = vld [vmem:[#allocation8 + $0xc4] ss:$8 sps:$4 sm:$0xff]  }
 0x202   : > { %v1116_v57 = vmax.f32 %v1064_v32, 0.0  ;;  %1625 = vmatprep.subr.bf16.mxu0 %v3893_v24 }
 0x203   : > { %v1117_v59 = vmax.f32 %v1066_v34, 0.0 }
 0x204   : > { %v1138_v41 = vpack.c.bf16 %v1116_v57, %v1114_v37  ;;  %v3906_v37 = vld [vmem:[#allocation8 + $0xc0] ss:$8 sps:$4 sm:$0xff]  }
 0x205   : > { %v1139_v45 = vpack.c.bf16 %v1117_v59, %v1115_v40  ;;  %v1069_v13 = vpop.f32.mrb[52].mxu1  ;;  %1626 = vmatpush1.bf16.msra.mxu0 %v3891_v36  ;;  %v3911_v40 = vld [vmem:[#allocation8 + $0xd4] ss:$8 sps:$4 sm:$0xff]  }
 0x206   : > { %v1070_v3 = vadd.f32 %v1069_v13, %v4646_v8  ;;  %v1071_v48 = vpop.f32.mrb[53].mxu1  ;;  %1627 = vmatprep.subr.bf16.mxu0 %v3896_v39 }
 0x207   : > { %v1072_v6 = vadd.f32 %v1071_v48, %v4649_v18  ;;  %v1073_v54 = vpop.f32.mrb[54].mxu1  ;;  %1410 = vmatprep.mubr.bf16.mxu0 %v1139_v45  ;;  %v1756_v45 = vld [vmem:[#allocation7 + $0x4] sm:$0x3]  ;;  %v3909_v48 = vld [vmem:[#allocation8 + $0xd0] ss:$8 sps:$4 sm:$0xff]  }
 0x208   : > { %v1074_v5 = vadd.f32 %v1073_v54, %v4646_v8  ;;  %v1075_v55 = vpop.f32.mrb[55].mxu1  ;;  %1411 = vmatmul.mubr.bf16.gmra.mrb[16].mxu0 %v1138_v41  ;;  %v1118_v62 = vmax.f32 %v1070_v3, 0.0  ;;  %v3914_v54 = vld [vmem:[#allocation8 + $0xe4] ss:$8 sps:$4 sm:$0xff]  }
 0x209   : > { %v1076_v58 = vadd.f32 %v1075_v55, %v4649_v18  ;;  %1628 = vmatpush1.bf16.msra.mxu0 %v3894_v50  ;;  %v1119_v1 = vmax.f32 %v1072_v6, 0.0 }
 0x20a   : > { %v1120_v63 = vmax.f32 %v1074_v5, 0.0  ;;  %1629 = vmatprep.subr.bf16.mxu0 %v3899_v53  ;;  %v4688_v5 = vrot.slane %v1756_v45, %v4564_v44 }
 0x20b   : > { %v1121_v2 = vmax.f32 %v1076_v58, 0.0 }
 0x20c   : > { %v1140_v4 = vpack.c.bf16 %v1120_v63, %v1118_v62  ;;  %v3912_v63 = vld [vmem:[#allocation8 + $0xe0] ss:$8 sps:$4 sm:$0xff]  }
 0x20d   : > { %v1141_v35 = vpack.c.bf16 %v1121_v2, %v1119_v1  ;;  %v1079_v16 = vpop.f32.mrb[56].mxu1  ;;  %1630 = vmatpush1.bf16.msra.mxu0 %v3897_v61  ;;  %v4691_v61 = vrot.slane %v1756_v45, %v4566_v46 }
 0x20e   : > { %v1080_v9 = vadd.f32 %v1079_v16, %v4646_v8  ;;  %v1081_v17 = vpop.f32.mrb[57].mxu1  ;;  %1631 = vmatprep.subr.bf16.mxu0 %v3902_v0 }
 0x20f   : > { %v1082_v15 = vadd.f32 %v1081_v17, %v4649_v18  ;;  %v1083_v19 = vpop.f32.mrb[58].mxu1  ;;  %1420 = vmatprep.mubr.bf16.mxu0 %v1141_v35  ;;  %v3915_v17 = vld [vmem:[#allocation8 + $0xf0] ss:$8 sps:$4 sm:$0xff]  }
 0x210   : > { %v1084_v20 = vadd.f32 %v1083_v19, %v4646_v8  ;;  %v1085_v21 = vpop.f32.mrb[59].mxu1  ;;  %1421 = vmatmul.mubr.bf16.gmra.mrb[20].mxu0 %v1140_v4  ;;  %v1122_v23 = vmax.f32 %v1080_v9, 0.0  ;;  %v3920_v19 = vld [vmem:[#allocation8 + $0x204] ss:$8 sps:$4 sm:$0xff]  }
 0x211   : > { %v1086_v22 = vadd.f32 %v1085_v21, %v4649_v18  ;;  %1632 = vmatpush1.bf16.msra.mxu0 %v3900_v7  ;;  %v1123_v25 = vmax.f32 %v1082_v15, 0.0 }
 0x212   : > { %v1124_v24 = vmax.f32 %v1084_v20, 0.0  ;;  %1633 = vmatprep.subr.bf16.mxu0 %v3905_v14 }
 0x213   : > { %v1125_v32 = vmax.f32 %v1086_v22, 0.0 }
 0x214   : > { %v1142_v33 = vpack.c.bf16 %v1124_v24, %v1122_v23 }
 0x215   : > { %v1143_v34 = vpack.c.bf16 %v1125_v32, %v1123_v25  ;;  %v1089_v36 = vpop.f32.mrb[60].mxu1  ;;  %1634 = vmatpush1.bf16.msra.mxu0 %v3903_v47  ;;  %v3918_v47 = vld [vmem:[#allocation8 + $0x200] ss:$8 sps:$4 sm:$0xff]  }
 0x216   : > { %v1090_v57 = vadd.f32 %v1089_v36, %v4646_v8  ;;  %v1091_v39 = vpop.f32.mrb[61].mxu1  ;;  %1635 = vmatprep.subr.bf16.mxu0 %v3908_v49  ;;  %v3923_v49 = vld [vmem:[#allocation8 + $0x214] ss:$8 sps:$4 sm:$0xff]  }
 0x217   : > { %v1092_v59 = vadd.f32 %v1091_v39, %v4649_v18  ;;  %v1093_v41 = vpop.f32.mrb[62].mxu1  ;;  %1430 = vmatprep.mubr.bf16.mxu0 %v1143_v34 }
 0x218   : > { %v1094_v13 = vadd.f32 %v1093_v41, %v4646_v8  ;;  %v1095_v50 = vpop.f32.mrb[63].mxu1  ;;  %1431 = vmatmul.mubr.bf16.gmra.mrb[24].mxu0 %v1142_v33  ;;  %v1126_v53 = vmax.f32 %v1090_v57, 0.0  ;;  %v3921_v57 = vld [vmem:[#allocation8 + $0x210] ss:$8 sps:$4 sm:$0xff]  }
 0x219   : > { %v1096_v3 = vadd.f32 %v1095_v50, %v4649_v18  ;;  %1636 = vmatpush1.bf16.msra.mxu0 %v3906_v37  ;;  %v1127_v55 = vmax.f32 %v1092_v59, 0.0  ;;  %v3917_v18 = vld [vmem:[#allocation8 + $0xf4] ss:$8 sps:$4 sm:$0xff]   ;;  %v3926_v59 = vld [vmem:[#allocation8 + $0x224] ss:$8 sps:$4 sm:$0xff]  }
 0x21a   : > { %v1128_v6 = vmax.f32 %v1094_v13, 0.0  ;;  %1637 = vmatprep.subr.bf16.mxu0 %v3911_v40  ;;  %v3924_v50 = vld [vmem:[#allocation8 + $0x220] ss:$8 sps:$4 sm:$0xff]  }
 0x21b   : > { %v1129_v58 = vmax.f32 %v1096_v3, 0.0 }
 0x21c   : > { %v1144_v62 = vpack.c.bf16 %v1128_v6, %v1126_v53 }
 0x21d   : > { %v1145_v8 = vpack.c.bf16 %v1129_v58, %v1127_v55  ;;  %1638 = vmatpush1.bf16.msra.mxu0 %v3909_v48  ;;  %v1962_v0 = vpop.f32.mrb[64].mxu1  ;;  %v3929_v48 = vld [vmem:[#allocation8 + $0x234] ss:$8 sps:$4 sm:$0xff]  }
 0x21e   : > { %1639 = vmatprep.subr.bf16.mxu0 %v3914_v54  ;;  %v1963_v1 = vadd.f32 %v1962_v0, %v4688_v5  ;;  %v1964_v2 = vpop.f32.mrb[65].mxu1 }
 0x21f   : > { %1440 = vmatprep.mubr.bf16.mxu0 %v1145_v8  ;;  %v1965_v4 = vadd.f32 %v1964_v2, %v4691_v61  ;;  %v1966_v35 = vpop.f32.mrb[66].mxu1  ;;  %v3927_v8 = vld [vmem:[#allocation8 + $0x230] ss:$8 sps:$4 sm:$0xff]  }
 0x220   : > { %1441 = vmatmul.mubr.bf16.gmra.mrb[28].mxu0 %v1144_v62  ;;  %v2041_v16 = vmax.f32 %v1963_v1, 0.0  ;;  %v1967_v7 = vadd.f32 %v1966_v35, %v4688_v5  ;;  %v1968_v9 = vpop.f32.mrb[67].mxu1  ;;  %v3930_v35 = vld [vmem:[#allocation8 + $0x240] ss:$8 sps:$4 sm:$0xff]  }
 0x221   : > { %1640 = vmatpush1.bf16.msra.mxu0 %v3912_v63  ;;  %1643 = vmatprep.mubr.bf16.mxu0 %v4584_v60  ;;  %v2042_v14 = vmax.f32 %v1965_v4, 0.0  ;;  %v1969_v15 = vadd.f32 %v1968_v9, %v4691_v61 }
 0x222   : > { %1641 = vmatprep.subr.bf16.mxu0 %v3917_v18  ;;  %v2043_v20 = vmax.f32 %v1967_v7, 0.0  ;;  %v3932_v18 = vld [vmem:[#allocation8 + $0x244] ss:$8 sps:$4 sm:$0xff]   ;;  %v3935_v7 = vld [vmem:[#allocation8 + $0x254] ss:$8 sps:$4 sm:$0xff]  }
 0x223   : > { %v2044_v21 = vmax.f32 %v1969_v15, 0.0 }
 0x224   : > { %v4698_v22 = vpack.c.bf16 %v2043_v20, %v2041_v16 }
 0x225   : > { %1642 = vmatpush1.bf16.msra.mxu0 %v3915_v17  ;;  %v4700_v23 = vpack.c.bf16 %v2044_v21, %v2042_v14  ;;  %v1972_v24 = vpop.f32.mrb[68].mxu1  ;;  %v3933_v21 = vld [vmem:[#allocation8 + $0x250] ss:$8 sps:$4 sm:$0xff]  }
 0x226   : > { %2281 = vmatprep.subr.bf16.mxu0 %v3920_v19  ;;  %v1973_v25 = vadd.f32 %v1972_v24, %v4688_v5  ;;  %v1974_v60 = vpop.f32.mrb[69].mxu1 }
 0x227   : > { %v1975_v32 = vadd.f32 %v1974_v60, %v4691_v61  ;;  %v1976_v33 = vpop.f32.mrb[70].mxu1 }
 0x228   : > { %1644 = vmatmul.mubr.bf16.vlgmr.msra.gmra.mrb[0].mxu0 %v4582_v28  ;;  %v2045_v34 = vmax.f32 %v1973_v25, 0.0  ;;  %v1977_v36 = vadd.f32 %v1976_v33, %v4688_v5  ;;  %v1978_v37 = vpop.f32.mrb[71].mxu1  ;;  %v3936_v33 = vld [vmem:[#allocation8 + $0x260] ss:$8 sps:$4 sm:$0xff]  }
 0x229   : > { %1653 = vmatprep.mubr.bf16.mxu0 %v4594_v12  ;;  %2282 = vmatpush1.bf16.msra.mxu0 %v3918_v47  ;;  %v2046_v39 = vmax.f32 %v1975_v32, 0.0  ;;  %v1979_v40 = vadd.f32 %v1978_v37, %v4691_v61 }
 0x22a   : > { %2283 = vmatprep.subr.bf16.mxu0 %v3923_v49  ;;  %v2047_v41 = vmax.f32 %v1977_v36, 0.0  ;;  %v3938_v49 = vld [vmem:[#allocation8 + $0x264] ss:$8 sps:$4 sm:$0xff]   ;;  %v3941_v36 = vld [vmem:[#allocation8 + $0x274] ss:$8 sps:$4 sm:$0xff]  }
 0x22b   : > { %v2048_v45 = vmax.f32 %v1979_v40, 0.0 }
 0x22c   : > { %v4708_v13 = vpack.c.bf16 %v2047_v41, %v2045_v34 }
 0x22d   : > { %2284 = vmatpush1.bf16.msra.mxu0 %v3921_v57  ;;  %v4710_v28 = vpack.c.bf16 %v2048_v45, %v2046_v39  ;;  %v1982_v3 = vpop.f32.mrb[72].mxu1  ;;  %v3939_v45 = vld [vmem:[#allocation8 + $0x270] ss:$8 sps:$4 sm:$0xff]  }
 0x22e   : > { %2285 = vmatprep.subr.bf16.mxu0 %v3926_v59  ;;  %v1983_v12 = vadd.f32 %v1982_v3, %v4688_v5  ;;  %v1984_v53 = vpop.f32.mrb[73].mxu1 }
 0x22f   : > { %v1985_v6 = vadd.f32 %v1984_v53, %v4691_v61  ;;  %v1986_v54 = vpop.f32.mrb[74].mxu1 }
 0x230   : > { %1654 = vmatmul.mubr.bf16.gmra.mrb[4].mxu0 %v4592_v11  ;;  %v2049_v55 = vmax.f32 %v1983_v12, 0.0  ;;  %v1987_v58 = vadd.f32 %v1986_v54, %v4688_v5  ;;  %v1988_v62 = vpop.f32.mrb[75].mxu1  ;;  %v3942_v54 = vld [vmem:[#allocation8 + $0x280] ss:$8 sps:$4 sm:$0xff]  }
 0x231   : > { %1663 = vmatprep.mubr.bf16.mxu0 %v4604_v29  ;;  %2286 = vmatpush1.bf16.msra.mxu0 %v3924_v50  ;;  %v2050_v63 = vmax.f32 %v1985_v6, 0.0  ;;  %v1989_v0 = vadd.f32 %v1988_v62, %v4691_v61 }
 0x232   : > { %2287 = vmatprep.subr.bf16.mxu0 %v3929_v48  ;;  %v2051_v1 = vmax.f32 %v1987_v58, 0.0  ;;  %v3944_v48 = vld [vmem:[#allocation8 + $0x284] ss:$8 sps:$4 sm:$0xff]   ;;  %v3947_v58 = vld [vmem:[#allocation8 + $0x294] ss:$8 sps:$4 sm:$0xff]  }
 0x233   : > { %v2052_v2 = vmax.f32 %v1989_v0, 0.0 }
 0x234   : > { %v4718_v4 = vpack.c.bf16 %v2051_v1, %v2049_v55 }
 0x235   : > { %2288 = vmatpush1.bf16.msra.mxu0 %v3927_v8  ;;  %v4720_v11 = vpack.c.bf16 %v2052_v2, %v2050_v63  ;;  %v1992_v16 = vpop.f32.mrb[76].mxu1  ;;  %v3945_v2 = vld [vmem:[#allocation8 + $0x290] ss:$8 sps:$4 sm:$0xff]  }
 0x236   : > { %2289 = vmatprep.subr.bf16.mxu0 %v3932_v18  ;;  %v1993_v29 = vadd.f32 %v1992_v16, %v4688_v5  ;;  %v1994_v9 = vpop.f32.mrb[77].mxu1 }
 0x237   : > { %v1995_v17 = vadd.f32 %v1994_v9, %v4691_v61  ;;  %v1996_v14 = vpop.f32.mrb[78].mxu1 }
 0x238   : > { %1664 = vmatmul.mubr.bf16.gmra.mrb[8].mxu0 %v4602_v27  ;;  %v2053_v15 = vmax.f32 %v1993_v29, 0.0  ;;  %v1997_v19 = vadd.f32 %v1996_v14, %v4688_v5  ;;  %v1998_v20 = vpop.f32.mrb[79].mxu1  ;;  %v3948_v14 = vld [vmem:[#allocation8 + $0x2a0] ss:$8 sps:$4 sm:$0xff]  }
 0x239   : > { %1673 = vmatprep.mubr.bf16.mxu0 %v4614_v43  ;;  %2290 = vmatpush1.bf16.msra.mxu0 %v3930_v35  ;;  %v2054_v47 = vmax.f32 %v1995_v17, 0.0  ;;  %v1999_v24 = vadd.f32 %v1998_v20, %v4691_v61 }
 0x23a   : > { %2291 = vmatprep.subr.bf16.mxu0 %v3935_v7  ;;  %v2055_v25 = vmax.f32 %v1997_v19, 0.0  ;;  %v3950_v7 = vld [vmem:[#allocation8 + $0x2a4] ss:$8 sps:$4 sm:$0xff]   ;;  %v3953_v19 = vld [vmem:[#allocation8 + $0x2b4] ss:$8 sps:$4 sm:$0xff]  }
 0x23b   : > { %v2056_v60 = vmax.f32 %v1999_v24, 0.0 }
 0x23c   : > { %v4728_v32 = vpack.c.bf16 %v2055_v25, %v2053_v15 }
 0x23d   : > { %2292 = vmatpush1.bf16.msra.mxu0 %v3933_v21  ;;  %v4730_v27 = vpack.c.bf16 %v2056_v60, %v2054_v47  ;;  %v2002_v34 = vpop.f32.mrb[80].mxu1  ;;  %v3951_v60 = vld [vmem:[#allocation8 + $0x2b0] ss:$8 sps:$4 sm:$0xff]  }
 0x23e   : > { %2293 = vmatprep.subr.bf16.mxu0 %v3938_v49  ;;  %v2003_v43 = vadd.f32 %v2002_v34, %v4688_v5  ;;  %v2004_v37 = vpop.f32.mrb[81].mxu1 }
 0x23f   : > { %v2005_v57 = vadd.f32 %v2004_v37, %v4691_v61  ;;  %v2006_v39 = vpop.f32.mrb[82].mxu1 }
 0x240   : > { %1674 = vmatmul.mubr.bf16.gmra.mrb[12].mxu0 %v4612_v42  ;;  %v2057_v40 = vmax.f32 %v2003_v43, 0.0  ;;  %v2007_v59 = vadd.f32 %v2006_v39, %v4688_v5  ;;  %v2008_v41 = vpop.f32.mrb[83].mxu1  ;;  %v3954_v39 = vld [vmem:[#allocation8 + $0x2c0] ss:$8 sps:$4 sm:$0xff]  }
 0x241   : > { %1683 = vmatprep.mubr.bf16.mxu0 %v4623_v26  ;;  %2294 = vmatpush1.bf16.msra.mxu0 %v3936_v33  ;;  %v2058_v50 = vmax.f32 %v2005_v57, 0.0  ;;  %v2009_v3 = vadd.f32 %v2008_v41, %v4691_v61 }
 0x242   : > { %2295 = vmatprep.subr.bf16.mxu0 %v3941_v36  ;;  %v2059_v12 = vmax.f32 %v2007_v59, 0.0  ;;  %v3956_v36 = vld [vmem:[#allocation8 + $0x2c4] ss:$8 sps:$4 sm:$0xff]   ;;  %v3959_v59 = vld [vmem:[#allocation8 + $0x2d4] ss:$8 sps:$4 sm:$0xff]  }
 0x243   : > { %v2060_v53 = vmax.f32 %v2009_v3, 0.0  ;;  %v2458_v3 = vld [vmem:[#allocation7 + $0x6] sm:$0x3] }
 0x244   : > { %v4738_v6 = vpack.c.bf16 %v2059_v12, %v2057_v40 }
 0x245   : > { %2296 = vmatpush1.bf16.msra.mxu0 %v3939_v45  ;;  %v4740_v42 = vpack.c.bf16 %v2060_v53, %v2058_v50  ;;  %v2012_v55 = vpop.f32.mrb[84].mxu1 }
 0x246   : > { %2297 = vmatprep.subr.bf16.mxu0 %v3944_v48  ;;  %v2013_v26 = vadd.f32 %v2012_v55, %v4688_v5  ;;  %v2014_v62 = vpop.f32.mrb[85].mxu1 }
 0x247   : > { %v2015_v8 = vadd.f32 %v2014_v62, %v4691_v61  ;;  %v2016_v63 = vpop.f32.mrb[86].mxu1 }
 0x248   : > { %1684 = vmatmul.mubr.bf16.gmra.mrb[16].mxu0 %v4621_v56  ;;  %v2061_v0 = vmax.f32 %v2013_v26, 0.0  ;;  %v2017_v18 = vadd.f32 %v2016_v63, %v4688_v5  ;;  %v2018_v1 = vpop.f32.mrb[87].mxu1  ;;  %v3962_v26 = vld [vmem:[#allocation8 + $0x2e4] ss:$8 sps:$4 sm:$0xff]  }
 0x249   : > { %1693 = vmatprep.mubr.bf16.mxu0 %v4631_v10  ;;  %2298 = vmatpush1.bf16.msra.mxu0 %v3942_v54  ;;  %v2062_v35 = vmax.f32 %v2015_v8, 0.0  ;;  %v2019_v16 = vadd.f32 %v2018_v1, %v4691_v61  ;;  %v3957_v54 = vld [vmem:[#allocation8 + $0x2d0] ss:$8 sps:$4 sm:$0xff]   ;;  %v4769_v8 = vrot.slane %v2458_v3, %v4564_v44  ;;  %v3965_v1 = vld [vmem:[#allocation8 + $0x2f4] ss:$8 sps:$4 sm:$0xff]  }
 0x24a   : > { %2299 = vmatprep.subr.bf16.mxu0 %v3947_v58  ;;  %v2063_v29 = vmax.f32 %v2017_v18, 0.0 }
 0x24b   : > { %v2064_v9 = vmax.f32 %v2019_v16, 0.0 }
 0x24c   : > { %v4748_v17 = vpack.c.bf16 %v2063_v29, %v2061_v0 }
 0x24d   : > { %2300 = vmatpush1.bf16.msra.mxu0 %v3945_v2  ;;  %v4750_v56 = vpack.c.bf16 %v2064_v9, %v2062_v35  ;;  %v2022_v15 = vpop.f32.mrb[88].mxu1 }
 0x24e   : > { %2301 = vmatprep.subr.bf16.mxu0 %v3950_v7  ;;  %v2023_v10 = vadd.f32 %v2022_v15, %v4688_v5  ;;  %v2024_v20 = vpop.f32.mrb[89].mxu1 }
 0x24f   : > { %v2025_v21 = vadd.f32 %v2024_v20, %v4691_v61  ;;  %v2026_v47 = vpop.f32.mrb[90].mxu1 }
 0x250   : > { %1694 = vmatmul.mubr.bf16.gmra.mrb[20].mxu0 %v4629_v38  ;;  %v2065_v24 = vmax.f32 %v2023_v10, 0.0  ;;  %v2027_v49 = vadd.f32 %v2026_v47, %v4688_v5  ;;  %v2028_v25 = vpop.f32.mrb[91].mxu1  ;;  %v3968_v10 = vld [vmem:[#allocation8 + $0x304] ss:$8 sps:$4 sm:$0xff]  }
 0x251   : > { %1703 = vmatprep.mubr.bf16.mxu0 %v4639_v31  ;;  %2302 = vmatpush1.bf16.msra.mxu0 %v3948_v14  ;;  %v2066_v33 = vmax.f32 %v2025_v21, 0.0  ;;  %v2029_v34 = vadd.f32 %v2028_v25, %v4691_v61  ;;  %v3963_v14 = vld [vmem:[#allocation8 + $0x2f0] ss:$8 sps:$4 sm:$0xff]   ;;  %v3971_v25 = vld [vmem:[#allocation8 + $0x314] ss:$8 sps:$4 sm:$0xff]  }
 0x252   : > { %2303 = vmatprep.subr.bf16.mxu0 %v3953_v19  ;;  %v2067_v43 = vmax.f32 %v2027_v49, 0.0 }
 0x253   : > { %v2068_v37 = vmax.f32 %v2029_v34, 0.0 }
 0x254   : > { %v4758_v57 = vpack.c.bf16 %v2067_v43, %v2065_v24  ;;  %v3966_v24 = vld [vmem:[#allocation8 + $0x300] ss:$8 sps:$4 sm:$0xff]  }
 0x255   : > { %2304 = vmatpush1.bf16.msra.mxu0 %v3951_v60  ;;  %v4760_v38 = vpack.c.bf16 %v2068_v37, %v2066_v33  ;;  %v2032_v40 = vpop.f32.mrb[92].mxu1 }
 0x256   : > { %2305 = vmatprep.subr.bf16.mxu0 %v3956_v36  ;;  %v2033_v31 = vadd.f32 %v2032_v40, %v4688_v5  ;;  %v2034_v41 = vpop.f32.mrb[93].mxu1 }
 0x257   : > { %v2035_v45 = vadd.f32 %v2034_v41, %v4691_v61  ;;  %v2036_v50 = vpop.f32.mrb[94].mxu1 }
 0x258   : > { %1704 = vmatmul.mubr.bf16.gmra.mrb[24].mxu0 %v4637_v30  ;;  %v2069_v48 = vmax.f32 %v2033_v31, 0.0  ;;  %v2037_v12 = vadd.f32 %v2036_v50, %v4688_v5  ;;  %v2038_v53 = vpop.f32.mrb[95].mxu1  ;;  %v4772_v30 = vrot.slane %v2458_v3, %v4566_v46  ;;  %v3960_v5 = vld [vmem:[#allocation8 + $0x2e0] ss:$8 sps:$4 sm:$0xff]   ;;  %v3974_v31 = vld [vmem:[#allocation8 + $0x324] ss:$8 sps:$4 sm:$0xff]  }
 0x259   : > { %1713 = vmatprep.mubr.bf16.mxu0 %v4653_v52  ;;  %2306 = vmatpush1.bf16.msra.mxu0 %v3954_v39  ;;  %v2070_v55 = vmax.f32 %v2035_v45, 0.0  ;;  %v2039_v58 = vadd.f32 %v2038_v53, %v4691_v61  ;;  %v3969_v39 = vld [vmem:[#allocation8 + $0x310] ss:$8 sps:$4 sm:$0xff]   ;;  %v3972_v3 = vld [vmem:[#allocation8 + $0x320] ss:$8 sps:$4 sm:$0xff]  }
 0x25a   : > { %2307 = vmatprep.subr.bf16.mxu0 %v3959_v59  ;;  %v2071_v62 = vmax.f32 %v2037_v12, 0.0  ;;  %v3977_v12 = vld [vmem:[#allocation8 + $0x334] ss:$8 sps:$4 sm:$0xff]  }
 0x25b   : > { %v2072_v63 = vmax.f32 %v2039_v58, 0.0 }
 0x25c   : > { %v4774_v0 = vpack.c.bf16 %v2071_v62, %v2069_v48 }
 0x25d   : > { %2308 = vmatpush1.bf16.msra.mxu0 %v3957_v54  ;;  %v4776_v52 = vpack.c.bf16 %v2072_v63, %v2070_v55  ;;  %v2664_v18 = vpop.f32.mrb[96].mxu1  ;;  %v3975_v63 = vld [vmem:[#allocation8 + $0x330] ss:$8 sps:$4 sm:$0xff]  }
 0x25e   : > { %2309 = vmatprep.subr.bf16.mxu0 %v3962_v26  ;;  %v2665_v61 = vadd.f32 %v2664_v18, %v4769_v8  ;;  %v2666_v2 = vpop.f32.mrb[97].mxu1 }
 0x25f   : > { %v2667_v35 = vadd.f32 %v2666_v2, %v4772_v30  ;;  %v2668_v16 = vpop.f32.mrb[98].mxu1 }
 0x260   : > { %1714 = vmatmul.mubr.bf16.gmra.mrb[28].mxu0 %v4651_v51  ;;  %v2743_v7 = vmax.f32 %v2665_v61, 0.0  ;;  %v2669_v29 = vadd.f32 %v2668_v16, %v4769_v8  ;;  %v2670_v9 = vpop.f32.mrb[99].mxu1  ;;  %v3978_v16 = vld [vmem:[#allocation8 + $0x340] ss:$8 sps:$4 sm:$0xff]  }
 0x261   : > { %2310 = vmatpush1.bf16.msra.mxu0 %v3960_v5  ;;  %2313 = vmatprep.mubr.bf16.mxu0 %v4700_v23  ;;  %v2744_v15 = vmax.f32 %v2667_v35, 0.0  ;;  %v2671_v19 = vadd.f32 %v2670_v9, %v4772_v30 }
 0x262   : > { %2311 = vmatprep.subr.bf16.mxu0 %v3965_v1  ;;  %v2745_v20 = vmax.f32 %v2669_v29, 0.0  ;;  %v3980_v1 = vld [vmem:[#allocation8 + $0x344] ss:$8 sps:$4 sm:$0xff]   ;;  %v3983_v29 = vld [vmem:[#allocation8 + $0x354] ss:$8 sps:$4 sm:$0xff]  }
 0x263   : > { %v2746_v21 = vmax.f32 %v2671_v19, 0.0 }
 0x264   : > { %v4784_v47 = vpack.c.bf16 %v2745_v20, %v2743_v7 }
 0x265   : > { %2312 = vmatpush1.bf16.msra.mxu0 %v3963_v14  ;;  %v4786_v51 = vpack.c.bf16 %v2746_v21, %v2744_v15  ;;  %v2674_v49 = vpop.f32.mrb[100].mxu1  ;;  %v3981_v21 = vld [vmem:[#allocation8 + $0x350] ss:$8 sps:$4 sm:$0xff]  }
 0x266   : > { %2983 = vmatprep.subr.bf16.mxu0 %v3968_v10  ;;  %v2675_v60 = vadd.f32 %v2674_v49, %v4769_v8  ;;  %v2676_v33 = vpop.f32.mrb[101].mxu1 }
 0x267   : > { %v2677_v23 = vadd.f32 %v2676_v33, %v4772_v30  ;;  %v2678_v34 = vpop.f32.mrb[102].mxu1 }
 0x268   : > { %2314 = vmatmul.mubr.bf16.vlgmr.msra.gmra.mrb[0].mxu0 %v4698_v22  ;;  %v2747_v36 = vmax.f32 %v2675_v60, 0.0  ;;  %v2679_v43 = vadd.f32 %v2678_v34, %v4769_v8  ;;  %v2680_v37 = vpop.f32.mrb[103].mxu1  ;;  %v3984_v34 = vld [vmem:[#allocation8 + $0x360] ss:$8 sps:$4 sm:$0xff]  }
 0x269   : > { %2984 = vmatpush1.bf16.msra.mxu0 %v3966_v24  ;;  %2323 = vmatprep.mubr.bf16.mxu0 %v4710_v28  ;;  %v2748_v40 = vmax.f32 %v2677_v23, 0.0  ;;  %v2681_v59 = vadd.f32 %v2680_v37, %v4772_v30 }
 0x26a   : > { %2985 = vmatprep.subr.bf16.mxu0 %v3971_v25  ;;  %v2749_v41 = vmax.f32 %v2679_v43, 0.0  ;;  %v3986_v25 = vld [vmem:[#allocation8 + $0x364] ss:$8 sps:$4 sm:$0xff]   ;;  %v3989_v43 = vld [vmem:[#allocation8 + $0x374] ss:$8 sps:$4 sm:$0xff]  }
 0x26b   : > { %v2750_v45 = vmax.f32 %v2681_v59, 0.0 }
 0x26c   : > { %v4794_v50 = vpack.c.bf16 %v2749_v41, %v2747_v36 }
 0x26d   : > { %2986 = vmatpush1.bf16.msra.mxu0 %v3969_v39  ;;  %v4796_v22 = vpack.c.bf16 %v2750_v45, %v2748_v40  ;;  %v2684_v48 = vpop.f32.mrb[104].mxu1  ;;  %v3987_v45 = vld [vmem:[#allocation8 + $0x370] ss:$8 sps:$4 sm:$0xff]  }
 0x26e   : > { %2987 = vmatprep.subr.bf16.mxu0 %v3974_v31  ;;  %v2685_v53 = vadd.f32 %v2684_v48, %v4769_v8  ;;  %v2686_v54 = vpop.f32.mrb[105].mxu1 }
 0x26f   : > { %v2687_v28 = vadd.f32 %v2686_v54, %v4772_v30  ;;  %v2688_v55 = vpop.f32.mrb[106].mxu1 }
 0x270   : > { %2324 = vmatmul.mubr.bf16.gmra.mrb[4].mxu0 %v4708_v13  ;;  %v2751_v58 = vmax.f32 %v2685_v53, 0.0  ;;  %v2689_v26 = vadd.f32 %v2688_v55, %v4769_v8  ;;  %v2690_v62 = vpop.f32.mrb[107].mxu1  ;;  %v3990_v55 = vld [vmem:[#allocation8 + $0x380] ss:$8 sps:$4 sm:$0xff]  }
 0x271   : > { %2988 = vmatpush1.bf16.msra.mxu0 %v3972_v3  ;;  %2333 = vmatprep.mubr.bf16.mxu0 %v4720_v11  ;;  %v2752_v5 = vmax.f32 %v2687_v28, 0.0  ;;  %v2691_v18 = vadd.f32 %v2690_v62, %v4772_v30 }
 0x272   : > { %2989 = vmatprep.subr.bf16.mxu0 %v3977_v12  ;;  %v2753_v61 = vmax.f32 %v2689_v26, 0.0  ;;  %v3992_v12 = vld [vmem:[#allocation8 + $0x384] ss:$8 sps:$4 sm:$0xff]   ;;  %v3995_v26 = vld [vmem:[#allocation8 + $0x394] ss:$8 sps:$4 sm:$0xff]  }
 0x273   : > { %v2754_v2 = vmax.f32 %v2691_v18, 0.0 }
 0x274   : > { %v4804_v35 = vpack.c.bf16 %v2753_v61, %v2751_v58 }
 0x275   : > { %2990 = vmatpush1.bf16.msra.mxu0 %v3975_v63  ;;  %v4806_v13 = vpack.c.bf16 %v2754_v2, %v2752_v5  ;;  %v2694_v7 = vpop.f32.mrb[108].mxu1  ;;  %v3993_v2 = vld [vmem:[#allocation8 + $0x390] ss:$8 sps:$4 sm:$0xff]  }
 0x276   : > { %2991 = vmatprep.subr.bf16.mxu0 %v3980_v1  ;;  %v2695_v9 = vadd.f32 %v2694_v7, %v4769_v8  ;;  %v2696_v14 = vpop.f32.mrb[109].mxu1 }
 0x277   : > { %v2697_v11 = vadd.f32 %v2696_v14, %v4772_v30  ;;  %v2698_v15 = vpop.f32.mrb[110].mxu1 }
 0x278   : > { %2334 = vmatmul.mubr.bf16.gmra.mrb[8].mxu0 %v4718_v4  ;;  %v2755_v19 = vmax.f32 %v2695_v9, 0.0  ;;  %v2699_v10 = vadd.f32 %v2698_v15, %v4769_v8  ;;  %v2700_v20 = vpop.f32.mrb[111].mxu1  ;;  %v3996_v15 = vld [vmem:[#allocation8 + $0x3a0] ss:$8 sps:$4 sm:$0xff]  }
 0x279   : > { %2992 = vmatpush1.bf16.msra.mxu0 %v3978_v16  ;;  %2343 = vmatprep.mubr.bf16.mxu0 %v4730_v27  ;;  %v2756_v24 = vmax.f32 %v2697_v11, 0.0  ;;  %v2701_v49 = vadd.f32 %v2700_v20, %v4772_v30 }
 0x27a   : > { %2993 = vmatprep.subr.bf16.mxu0 %v3983_v29  ;;  %v2757_v60 = vmax.f32 %v2699_v10, 0.0  ;;  %v3998_v29 = vld [vmem:[#allocation8 + $0x3a4] ss:$8 sps:$4 sm:$0xff]   ;;  %v4001_v10 = vld [vmem:[#allocation8 + $0x3b4] ss:$8 sps:$4 sm:$0xff]  }
 0x27b   : > { %v2758_v33 = vmax.f32 %v2701_v49, 0.0 }
 0x27c   : > { %v4814_v23 = vpack.c.bf16 %v2757_v60, %v2755_v19 }
 0x27d   : > { %2994 = vmatpush1.bf16.msra.mxu0 %v3981_v21  ;;  %v4816_v4 = vpack.c.bf16 %v2758_v33, %v2756_v24  ;;  %v2704_v36 = vpop.f32.mrb[112].mxu1  ;;  %v3999_v33 = vld [vmem:[#allocation8 + $0x3b0] ss:$8 sps:$4 sm:$0xff]  }
 0x27e   : > { %2995 = vmatprep.subr.bf16.mxu0 %v3986_v25  ;;  %v2705_v37 = vadd.f32 %v2704_v36, %v4769_v8  ;;  %v2706_v39 = vpop.f32.mrb[113].mxu1 }
 0x27f   : > { %v2707_v27 = vadd.f32 %v2706_v39, %v4772_v30  ;;  %v2708_v40 = vpop.f32.mrb[114].mxu1 }
 0x280   : > { %2344 = vmatmul.mubr.bf16.gmra.mrb[12].mxu0 %v4728_v32  ;;  %v2759_v59 = vmax.f32 %v2705_v37, 0.0  ;;  %v2709_v31 = vadd.f32 %v2708_v40, %v4769_v8  ;;  %v2710_v41 = vpop.f32.mrb[115].mxu1  ;;  %v4002_v40 = vld [vmem:[#allocation8 + $0x3c0] ss:$8 sps:$4 sm:$0xff]  }
 0x281   : > { %2996 = vmatpush1.bf16.msra.mxu0 %v3984_v34  ;;  %2353 = vmatprep.mubr.bf16.mxu0 %v4740_v42  ;;  %v2760_v3 = vmax.f32 %v2707_v27, 0.0  ;;  %v2711_v48 = vadd.f32 %v2710_v41, %v4772_v30 }
 0x282   : > { %2997 = vmatprep.subr.bf16.mxu0 %v3989_v43  ;;  %v2761_v53 = vmax.f32 %v2709_v31, 0.0  ;;  %v4004_v43 = vld [vmem:[#allocation8 + $0x3c4] ss:$8 sps:$4 sm:$0xff]   ;;  %v4007_v31 = vld [vmem:[#allocation8 + $0x3d4] ss:$8 sps:$4 sm:$0xff]  }
 0x283   : > { %v2762_v54 = vmax.f32 %v2711_v48, 0.0 }
 0x284   : > { %v4824_v28 = vpack.c.bf16 %v2761_v53, %v2759_v59 }
 0x285   : > { %2998 = vmatpush1.bf16.msra.mxu0 %v3987_v45  ;;  %v4826_v32 = vpack.c.bf16 %v2762_v54, %v2760_v3  ;;  %v2714_v58 = vpop.f32.mrb[116].mxu1  ;;  %v4005_v54 = vld [vmem:[#allocation8 + $0x3d0] ss:$8 sps:$4 sm:$0xff]  }
 0x286   : > { %2999 = vmatprep.subr.bf16.mxu0 %v3992_v12  ;;  %v2715_v62 = vadd.f32 %v2714_v58, %v4769_v8  ;;  %v2716_v63 = vpop.f32.mrb[117].mxu1 }
 0x287   : > { %v2717_v42 = vadd.f32 %v2716_v63, %v4772_v30  ;;  %v2718_v5 = vpop.f32.mrb[118].mxu1 }
 0x288   : > { %2354 = vmatmul.mubr.bf16.gmra.mrb[16].mxu0 %v4738_v6  ;;  %v2763_v18 = vmax.f32 %v2715_v62, 0.0  ;;  %v2719_v1 = vadd.f32 %v2718_v5, %v4769_v8  ;;  %v2720_v61 = vpop.f32.mrb[119].mxu1  ;;  %v4008_v5 = vld [vmem:[#allocation8 + $0x3e0] ss:$8 sps:$4 sm:$0xff]  }
 0x289   : > { %3000 = vmatpush1.bf16.msra.mxu0 %v3990_v55  ;;  %2363 = vmatprep.mubr.bf16.mxu0 %v4750_v56  ;;  %v2764_v16 = vmax.f32 %v2717_v42, 0.0  ;;  %v2721_v7 = vadd.f32 %v2720_v61, %v4772_v30 }
 0x28a   : > { %3001 = vmatprep.subr.bf16.mxu0 %v3995_v26  ;;  %v2765_v9 = vmax.f32 %v2719_v1, 0.0  ;;  %v4010_v26 = vld [vmem:[#allocation8 + $0x3e4] ss:$8 sps:$4 sm:$0xff]  }
 0x28b   : > { %v2766_v14 = vmax.f32 %v2721_v7, 0.0 }
 0x28c   : > { %v4834_v11 = vpack.c.bf16 %v2765_v9, %v2763_v18 }
 0x28d   : > { %3002 = vmatpush1.bf16.msra.mxu0 %v3993_v2  ;;  %v4836_v6 = vpack.c.bf16 %v2766_v14, %v2764_v16  ;;  %v2724_v19 = vpop.f32.mrb[120].mxu1 }
 0x28e   : > { %3003 = vmatprep.subr.bf16.mxu0 %v3998_v29  ;;  %v2725_v20 = vadd.f32 %v2724_v19, %v4769_v8  ;;  %v2726_v21 = vpop.f32.mrb[121].mxu1 }
 0x28f   : > { %v2727_v56 = vadd.f32 %v2726_v21, %v4772_v30  ;;  %v2728_v24 = vpop.f32.mrb[122].mxu1 }
 0x290   : > { %2364 = vmatmul.mubr.bf16.gmra.mrb[20].mxu0 %v4748_v17  ;;  %v2767_v49 = vmax.f32 %v2725_v20, 0.0  ;;  %v2729_v25 = vadd.f32 %v2728_v24, %v4769_v8  ;;  %v2730_v60 = vpop.f32.mrb[123].mxu1 }
 0x291   : > { %3004 = vmatpush1.bf16.msra.mxu0 %v3996_v15  ;;  %2373 = vmatprep.mubr.bf16.mxu0 %v4760_v38  ;;  %v2768_v34 = vmax.f32 %v2727_v56, 0.0  ;;  %v2731_v36 = vadd.f32 %v2730_v60, %v4772_v30 }
 0x292   : > { %3005 = vmatprep.subr.bf16.mxu0 %v4001_v10  ;;  %v2769_v37 = vmax.f32 %v2729_v25, 0.0 }
 0x293   : > { %v2770_v39 = vmax.f32 %v2731_v36, 0.0 }
 0x294   : > { %v2787_v27 = vpack.c.bf16 %v2769_v37, %v2767_v49 }
 0x295   : > { %3006 = vmatpush1.bf16.msra.mxu0 %v3999_v33  ;;  %v2788_v59 = vpack.c.bf16 %v2770_v39, %v2768_v34  ;;  %v2734_v17 = vpop.f32.mrb[124].mxu1 }
 0x296   : > { %3007 = vmatprep.subr.bf16.mxu0 %v4004_v43  ;;  %v2735_v41 = vadd.f32 %v2734_v17, %v4769_v8  ;;  %v2736_v45 = vpop.f32.mrb[125].mxu1 }
 0x297   : > { %v2737_v3 = vadd.f32 %v2736_v45, %v4772_v30  ;;  %v2738_v38 = vpop.f32.mrb[126].mxu1 }
 0x298   : > { %2374 = vmatmul.mubr.bf16.gmra.mrb[24].mxu0 %v4758_v57  ;;  %v2771_v48 = vmax.f32 %v2735_v41, 0.0  ;;  %v2739_v12 = vadd.f32 %v2738_v38, %v4769_v8  ;;  %v2740_v53 = vpop.f32.mrb[127].mxu1  ;;  %v4013_v57 = vld [vmem:[#allocation8 + $0x3f4] ss:$8 sps:$4 sm:$0xff]   ;;  %v4011_v8 = vld [vmem:[#allocation8 + $0x3f0] ss:$8 sps:$4 sm:$0xff]  }
 0x299   : > { %3008 = vmatpush1.bf16.msra.mxu0 %v4002_v40  ;;  %2383 = vmatprep.mubr.bf16.mxu0 %v4776_v52  ;;  %v2772_v55 = vmax.f32 %v2737_v3, 0.0  ;;  %v2741_v58 = vadd.f32 %v2740_v53, %v4772_v30  ;;  %v3128_v30 = vld [vmem:[%s4994_s4] sm:$0x3] }
 0x29a   : > { %3009 = vmatprep.subr.bf16.mxu0 %v4007_v31  ;;  %v2773_v62 = vmax.f32 %v2739_v12, 0.0  ;;  %v4871_v52 = vrot.slane %v3128_v30, %v4566_v46 }
 0x29b   : > { %v2774_v63 = vmax.f32 %v2741_v58, 0.0 }
 0x29c   : > { %v2789_v42 = vpack.c.bf16 %v2773_v62, %v2771_v48 }
 0x29d   : > { %3010 = vmatpush1.bf16.msra.mxu0 %v4005_v54  ;;  %v2790_v18 = vpack.c.bf16 %v2774_v63, %v2772_v55 }
 0x29e   : > { %3011 = vmatprep.subr.bf16.mxu0 %v4010_v26 }
 0x2a0   : > { %2384 = vmatmul.mubr.bf16.gmra.mrb[28].mxu0 %v4774_v0  ;;  %v4868_v0 = vrot.slane %v3128_v30, %v4564_v44 }
 0x2a1   : > { %3012 = vmatpush1.bf16.msra.mxu0 %v4008_v5  ;;  %3015 = vmatprep.mubr.bf16.mxu0 %v4786_v51 }
 0x2a2   : > { %3013 = vmatprep.subr.bf16.mxu0 %v4013_v57 }
 0x2a5   : > { %3014 = vmatpush1.bf16.msra.mxu0 %v4011_v8 }
 0x2a8   : > { %3016 = vmatmul.mubr.bf16.vlgmr.msra.gmra.mrb[0].mxu0 %v4784_v47 }
 0x2a9   : > { %3025 = vmatprep.mubr.bf16.mxu0 %v4796_v22 }
 0x2b0   : > { %3026 = vmatmul.mubr.bf16.gmra.mrb[4].mxu0 %v4794_v50 }
 0x2b1   : > { %3035 = vmatprep.mubr.bf16.mxu0 %v4806_v13 }
 0x2b8   : > { %3036 = vmatmul.mubr.bf16.gmra.mrb[8].mxu0 %v4804_v35 }
 0x2b9   : > { %3045 = vmatprep.mubr.bf16.mxu0 %v4816_v4 }
 0x2c0   : > { %3046 = vmatmul.mubr.bf16.gmra.mrb[12].mxu0 %v4814_v23 }
 0x2c1   : > { %3055 = vmatprep.mubr.bf16.mxu0 %v4826_v32 }
 0x2c8   : > { %3056 = vmatmul.mubr.bf16.gmra.mrb[16].mxu0 %v4824_v28 }
 0x2c9   : > { %3065 = vmatprep.mubr.bf16.mxu0 %v4836_v6 }
 0x2d0   : > { %3066 = vmatmul.mubr.bf16.gmra.mrb[20].mxu0 %v4834_v11 }
 0x2d1   : > { %3075 = vmatprep.mubr.bf16.mxu0 %v2788_v59 }
 0x2d8   : > { %3076 = vmatmul.mubr.bf16.gmra.mrb[24].mxu0 %v2787_v27 }
 0x2d9   : > { %3085 = vmatprep.mubr.bf16.mxu0 %v2790_v18 }
 0x2e0   : > { %3086 = vmatmul.mubr.bf16.gmra.mrb[28].mxu0 %v2789_v42 }
 0x37b   : > { %v3017_v47 = vpop.f32.mrb[0].mxu0 }
 0x37c   : > { %v3140_v51 = vadd.f32 %v4868_v0, %v3017_v47  ;;  %v3019_v50 = vpop.f32.mrb[1].mxu0 }
 0x37d   : > { %v3141_v22 = vadd.f32 %v4871_v52, %v3019_v50  ;;  %v3021_v35 = vpop.f32.mrb[2].mxu0 }
 0x37e   : > { %3172 = vst [vmem:[%s4875_s14] sm:$0xff] %v3140_v51  ;;  %v3142_v44 = vadd.f32 %v4868_v0, %v3021_v35  ;;  %v3023_v46 = vpop.f32.mrb[3].mxu0 }
 0x37f   : > { %3173 = vst [vmem:[%s4875_s14 + $0x8] sm:$0xff] %v3141_v22  ;;  %v3143_v13 = vadd.f32 %v4871_v52, %v3023_v46 }
 0x380   : > { %3174 = vst [vmem:[%s4875_s14 + $0x10] sm:$0xff] %v3142_v44 }
 0x381   : > { %3175 = vst [vmem:[%s4875_s14 + $0x18] sm:$0xff] %v3143_v13 }
 0x383   : > { %v3027_v23 = vpop.f32.mrb[4].mxu0 }
 0x384   : > { %v3144_v4 = vadd.f32 %v4868_v0, %v3027_v23  ;;  %v3029_v28 = vpop.f32.mrb[5].mxu0 }
 0x385   : > { %v3145_v32 = vadd.f32 %v4871_v52, %v3029_v28  ;;  %v3031_v1 = vpop.f32.mrb[6].mxu0 }
 0x386   : > { %3176 = vst [vmem:[%s4875_s14 + $0x20] sm:$0xff] %v3144_v4  ;;  %v3146_v61 = vadd.f32 %v4868_v0, %v3031_v1  ;;  %v3033_v2 = vpop.f32.mrb[7].mxu0 }
 0x387   : > { %3177 = vst [vmem:[%s4875_s14 + $0x28] sm:$0xff] %v3145_v32  ;;  %v3147_v16 = vadd.f32 %v4871_v52, %v3033_v2 }
 0x388   : > { %3178 = vst [vmem:[%s4875_s14 + $0x30] sm:$0xff] %v3146_v61 }
 0x389   : > { %3179 = vst [vmem:[%s4875_s14 + $0x38] sm:$0xff] %v3147_v16 }
 0x38b   : > { %v3037_v7 = vpop.f32.mrb[8].mxu0 }
 0x38c   : > { %v3148_v29 = vadd.f32 %v4868_v0, %v3037_v7  ;;  %v3039_v9 = vpop.f32.mrb[9].mxu0 }
 0x38d   : > { %v3149_v14 = vadd.f32 %v4871_v52, %v3039_v9  ;;  %v3041_v11 = vpop.f32.mrb[10].mxu0 }
 0x38e   : > { %3180 = vst [vmem:[%s4875_s14 + $0x40] sm:$0xff] %v3148_v29  ;;  %v3150_v15 = vadd.f32 %v4868_v0, %v3041_v11  ;;  %v3043_v6 = vpop.f32.mrb[11].mxu0 }
 0x38f   : > { %3181 = vst [vmem:[%s4875_s14 + $0x48] sm:$0xff] %v3149_v14  ;;  %v3151_v19 = vadd.f32 %v4871_v52, %v3043_v6 }
 0x390   : > { %3182 = vst [vmem:[%s4875_s14 + $0x50] sm:$0xff] %v3150_v15 }
 0x391   : > { %3183 = vst [vmem:[%s4875_s14 + $0x58] sm:$0xff] %v3151_v19 }
 0x393   : > { %v3047_v10 = vpop.f32.mrb[12].mxu0 }
 0x394   : > { %v3152_v20 = vadd.f32 %v4868_v0, %v3047_v10  ;;  %v3049_v21 = vpop.f32.mrb[13].mxu0 }
 0x395   : > { %v3153_v56 = vadd.f32 %v4871_v52, %v3049_v21  ;;  %v3051_v24 = vpop.f32.mrb[14].mxu0 }
 0x396   : > { %3184 = vst [vmem:[%s4875_s14 + $0x60] sm:$0xff] %v3152_v20  ;;  %v3154_v49 = vadd.f32 %v4868_v0, %v3051_v24  ;;  %v3053_v25 = vpop.f32.mrb[15].mxu0 }
 0x397   : > { %3185 = vst [vmem:[%s4875_s14 + $0x68] sm:$0xff] %v3153_v56  ;;  %v3155_v60 = vadd.f32 %v4871_v52, %v3053_v25 }
 0x398   : > { %3186 = vst [vmem:[%s4875_s14 + $0x70] sm:$0xff] %v3154_v49 }
 0x399   : > { %3187 = vst [vmem:[%s4875_s14 + $0x78] sm:$0xff] %v3155_v60 }
 0x39b   : > { %v3057_v33 = vpop.f32.mrb[16].mxu0 }
 0x39c   : > { %v3156_v34 = vadd.f32 %v4868_v0, %v3057_v33  ;;  %v3059_v36 = vpop.f32.mrb[17].mxu0 }
 0x39d   : > { %v3157_v43 = vadd.f32 %v4871_v52, %v3059_v36  ;;  %v3061_v37 = vpop.f32.mrb[18].mxu0 }
 0x39e   : > { %3188 = vst [vmem:[%s4875_s14 + $0x80] sm:$0xff] %v3156_v34  ;;  %v3158_v39 = vadd.f32 %v4868_v0, %v3061_v37  ;;  %v3063_v27 = vpop.f32.mrb[19].mxu0 }
 0x39f   : > { %3189 = vst [vmem:[%s4875_s14 + $0x88] sm:$0xff] %v3157_v43  ;;  %v3159_v40 = vadd.f32 %v4871_v52, %v3063_v27 }
 0x3a0   : > { %3190 = vst [vmem:[%s4875_s14 + $0x90] sm:$0xff] %v3158_v39 }
 0x3a1   : > { %3191 = vst [vmem:[%s4875_s14 + $0x98] sm:$0xff] %v3159_v40 }
 0x3a3   : > { %v3067_v59 = vpop.f32.mrb[20].mxu0 }
 0x3a4   : > { %v3160_v17 = vadd.f32 %v4868_v0, %v3067_v59  ;;  %v3069_v31 = vpop.f32.mrb[21].mxu0 }
 0x3a5   : > { %v3161_v41 = vadd.f32 %v4871_v52, %v3069_v31  ;;  %v3071_v45 = vpop.f32.mrb[22].mxu0 }
 0x3a6   : > { %3192 = vst [vmem:[%s4875_s14 + $0xa0] sm:$0xff] %v3160_v17  ;;  %v3162_v3 = vadd.f32 %v4868_v0, %v3071_v45  ;;  %v3073_v38 = vpop.f32.mrb[23].mxu0 }
 0x3a7   : > { %3193 = vst [vmem:[%s4875_s14 + $0xa8] sm:$0xff] %v3161_v41  ;;  %v3163_v48 = vadd.f32 %v4871_v52, %v3073_v38 }
 0x3a8   : > { %3194 = vst [vmem:[%s4875_s14 + $0xb0] sm:$0xff] %v3162_v3 }
 0x3a9   : > { %3195 = vst [vmem:[%s4875_s14 + $0xb8] sm:$0xff] %v3163_v48 }
 0x3ab   : > { %v3077_v12 = vpop.f32.mrb[24].mxu0 }
 0x3ac   : > { %v3164_v53 = vadd.f32 %v4868_v0, %v3077_v12  ;;  %v3079_v54 = vpop.f32.mrb[25].mxu0 }
 0x3ad   : > { %v3165_v55 = vadd.f32 %v4871_v52, %v3079_v54  ;;  %v3081_v58 = vpop.f32.mrb[26].mxu0 }
 0x3ae   : > { %3196 = vst [vmem:[%s4875_s14 + $0xc0] sm:$0xff] %v3164_v53  ;;  %v3166_v26 = vadd.f32 %v4868_v0, %v3081_v58  ;;  %v3083_v62 = vpop.f32.mrb[27].mxu0 }
 0x3af   : > { %3197 = vst [vmem:[%s4875_s14 + $0xc8] sm:$0xff] %v3165_v55  ;;  %v3167_v63 = vadd.f32 %v4871_v52, %v3083_v62 }
 0x3b0   : > { %3198 = vst [vmem:[%s4875_s14 + $0xd0] sm:$0xff] %v3166_v26 }
 0x3b1   : > { %3199 = vst [vmem:[%s4875_s14 + $0xd8] sm:$0xff] %v3167_v63 }
 0x3b3   : > { %v3087_v42 = vpop.f32.mrb[28].mxu0 }
 0x3b4   : > { %v3168_v5 = vadd.f32 %v4868_v0, %v3087_v42  ;;  %v3089_v18 = vpop.f32.mrb[29].mxu0 }
 0x3b5   : > { %v3169_v57 = vadd.f32 %v4871_v52, %v3089_v18  ;;  %v3091_v8 = vpop.f32.mrb[30].mxu0 }
 0x3b6   : > { %3200 = vst [vmem:[%s4875_s14 + $0xe0] sm:$0xff] %v3168_v5  ;;  %v3170_v30 = vadd.f32 %v4868_v0, %v3091_v8  ;;  %v3093_v47 = vpop.f32.mrb[31].mxu0 }
 0x3b7   : > { %3201 = vst [vmem:[%s4875_s14 + $0xe8] sm:$0xff] %v3169_v57  ;;  %v3171_v51 = vadd.f32 %v4871_v52, %v3093_v47 }
 0x3b8   : > { %3202 = vst [vmem:[%s4875_s14 + $0xf0] sm:$0xff] %v3170_v30 }
 0x3b9   : > { %3203 = vst [vmem:[%s4875_s14 + $0xf8] sm:$0xff] %v3171_v51 }
 0x3ba   : > { %4142 = shalt.err (!%p4139_p4)
}
 0x3bb   : > { %s4143_s9 = scalar_lea.hbm %s4940_s30, 4096  ;;  %s4147_s26 = scalar_lea.hbm %s4995_s5, 8192 }
 0x3bc   : > { %p4144_p9 = scmp.ne.s32.totalorder %s4940_s30, %s4143_s9  ;;  %p4148_p8 = scmp.lt.u32.totalorder %s4940_s30, %s4995_s5 }
 0x3bd   : > { %p4149_p13 = scmp.lt.u32.totalorder %s4147_s26, %s4143_s9  ;;  %p4151_p10 = scmp.lt.u32.totalorder %s4143_s9, %s4940_s30 }
 0x3be   : > { %p4145_p0 = pnand %p4144_p9, %p4394_p5 }
 0x3bf   : > { %p4150_p6 = por %p4149_p13, %p4148_p8 }
 0x3c0   : > { %p4146_p11 = pneg %p4145_p0 }
 0x3c1   : > { %p4152_p3 = por %p4151_p10, %p4150_p6 }
 0x3c3   : > { %p4153_p7 = pnand %p4152_p3, %p4146_p11 }
 0x3c5   : > { %4156 = shalt.err (!%p4153_p7)
}
 0x3c6   : > { %s4214_s11 = smov 256   ;;  %s4215_s15 = smov 16  }
 0x3c7   : > { %3729 = dma.vmem_to_hbm [thread:$0]  (%p4394_p5), %s4942_s13, 4096, %s4940_s30, %s3205_s22, %s4214_s11, %s4214_s11, %s4215_s15  }
 0x3c8 PF: > { %s3234_s16 = sand.u32 1, %s4191_s18   ;;  %p5013_p12 = scmp.ne.s32.totalorder %s5000_s25, 0 }
 0x3c9   : > { %p5014_p2 = scmp.ge.s32.totalorder %s4203_s21, 2  ;;  %s3235_s12 = scalar_lea.sflag [#allocation4], %s3234_s16 }
 0x3cb   : > { %p3746_p1 = pnand %p5014_p2, %p5013_p12 }
 0x3cd   : > { %4186 = dma.done.wait (!%p3746_p1), %s3235_s12, 4096  }
 0x3ce   : > { %4188 = vsyncadd (!%p3746_p1), %s3235_s12, 4294963200  ;;  %p20_p4 = scmp.ge.s32.totalorder %s4380_s28, 4   ;;  %s5015_s18 = smov %s4195_s19 }
 0x3cf   : > { %s5016_s19 = smov %s4199_s20  ;;  %s5017_s20 = smov %s4390_s27 }
 0x3d0   : > { %s5018_s21 = smov %s4380_s28  ;;  %22 = sbr.rel (!%p20_p4) target bundleno = 7 (0x7), region = 97 }
 0x3d7   :  { %3240 = vsyncpa [#allocation3], 1 }
 0x3d8   :  { %3242 = vsyncpa [#allocation3 + $0x1], 1 }
 0x3d9   :  { %3243 = vsyncpa [#allocation6], 1 }
 0x3da   :  { %3244 = vsyncpa [#allocation9], 1 }
 0x3db   :  { %3245 = vsyncpa [#allocation4], 1 }
 0x3dc   :  { %3247 = vsyncpa [#allocation4 + $0x1], 1 }

</bundles_post_ra>
